<compile_context>
chip_gen: v6e
topology: v6e:2x2x1
jax: 0.10.0
libtpu: 0.0.40
codegen_flags: <defaults>
</compile_context>

<pallas_src>
import functools

import numpy as np
import jax
import jax.numpy as jnp
from jax import lax
from jax.experimental import pallas as pl
from jax.experimental.pallas import tpu as pltpu


# -----------------------------------------------------------------------------
# sin-cos positional embedding (numpy glue, identical to the PyTorch reference)
# -----------------------------------------------------------------------------
def get_1d_sincos_pos_embed_from_grid(embed_dim, pos):
    assert embed_dim % 2 == 0
    omega = np.arange(embed_dim // 2, dtype=np.float64)
    omega /= embed_dim / 2.0
    omega = 1.0 / 10000 ** omega
    pos = pos.reshape(-1)
    out = np.einsum('m,d->md', pos, omega)
    return np.concatenate([np.sin(out), np.cos(out)], axis=1)


def get_2d_sincos_pos_embed_from_grid(embed_dim, grid):
    assert embed_dim % 2 == 0
    emb_h = get_1d_sincos_pos_embed_from_grid(embed_dim // 2, grid[0])
    emb_w = get_1d_sincos_pos_embed_from_grid(embed_dim // 2, grid[1])
    return np.concatenate([emb_h, emb_w], axis=1)


def get_2d_sincos_pos_embed(embed_dim, grid_size, cls_token=False, extra_tokens=0):
    grid_h = np.arange(grid_size, dtype=np.float32)
    grid_w = np.arange(grid_size, dtype=np.float32)
    grid = np.meshgrid(grid_w, grid_h)
    grid = np.stack(grid, axis=0).reshape([2, 1, grid_size, grid_size])
    pos_embed = get_2d_sincos_pos_embed_from_grid(embed_dim, grid)
    if cls_token and extra_tokens > 0:
        pos_embed = np.concatenate([np.zeros([extra_tokens, embed_dim]), pos_embed], axis=0)
    return pos_embed


# -----------------------------------------------------------------------------
# in-kernel helpers
# -----------------------------------------------------------------------------
_SQRT_2_OVER_PI = 0.7978845608028654


def _gelu_tanh(x):
    # TODO(synk): tanh-approx GELU instead of the reference's exact-erf GELU — tanh runs
    # on the EUP slot (frees the saturating VALU slot); |err| < ~1e-3, far below the bf16
    # MXU noise floor of this mixed-precision forward pass.
    return 0.5 * x * (1.0 + jnp.tanh(_SQRT_2_OVER_PI * (x + 0.044715 * x * x * x)))


def _layernorm(x, g, b, eps):
    mu = jnp.mean(x, axis=-1, keepdims=True)
    xc = x - mu
    var = jnp.mean(xc * xc, axis=-1, keepdims=True)
    return xc * lax.rsqrt(var + eps) * g + b


def _row_tile(m):
    """Largest row tile (multiple of 8, up to 1024) dividing m with >= 2 grid steps, so
    the row axis pipelines and can shard across both TensorCores on v7x."""
    for t in (1024, 512, 256, 128, 64, 32, 16, 8):
        if m % t == 0 and m // t >= 2:
            return t
    return m


def _token_tile(t):
    """Token tile for the patch-embed kernel: full extent when small / ragged, otherwise
    a 128-multiple tile so the (8,128) block constraint holds on the lane axis."""
    if t % 128 == 0:
        for tt in (512, 256, 128):
            if t % tt == 0:
                return tt
    return t


def _pick_batch_block(batch, n_tokens):
    """Batch elements folded into one grid step so the MXU row dimension (Bb*N) of the
    fused LN/qkv/proj/MLP matmuls is well filled, while keeping >= 2 grid steps so the
    batch axis still shards across both v7x TensorCores (and pipelines on v5e/v6e)."""
    cands = [bb for bb in range(1, batch + 1)
             if batch % bb == 0 and batch // bb >= 2 and bb * n_tokens <= 1024]
    if not cands:
        return 1
    for bb in cands:                      # smallest Bb that already fills ~256 MXU rows
        if bb * n_tokens >= 256:
            return bb
    return cands[-1]                      # otherwise the largest Bb that keeps grid >= 2


def _vmem_cap_bytes():
    try:
        return int(pltpu.get_tpu_info().vmem_capacity_bytes)
    except Exception:
        return 64 * 2 ** 20               # conservative: v7x physical VMEM per core


def _block_vmem_limit_bytes(bb, n, d, hid):
    """Scoped-VMEM budget for the fused encoder block: double-buffered activation blocks
    + single-buffered weights + in-kernel intermediates, with 2x slack for compiler
    temporaries, clamped below physical VMEM."""
    f32, bf16 = 4, 2
    rows = bb * n
    act = rows * d * f32
    weights = (3 * d * d + d * d + 2 * d * hid) * bf16 + (6 * d + hid) * f32
    inter = (rows * 3 * d * (f32 + bf16)          # qkv (f32 result + bf16 per-head slices)
             + 3 * rows * d * f32                 # x / attention scratch / residual temps
             + 2 * rows * hid * f32               # fc1 output + GELU
             + 3 * bb * n * n * f32)              # per-head scores / exp / probs
    est = 2 * (2 * act + 2 * act + weights + inter)
    return int(min(max(32 * 2 ** 20, est), int(0.9 * _vmem_cap_bytes())))


# -----------------------------------------------------------------------------
# Pallas kernels
# -----------------------------------------------------------------------------
def _patch_embed_kernel(p_ref, w_ref, b_ref, o_ref):
    # p_ref: (1, K, tT) f32 im2col patches in their native feature-major layout.
    # Contract over K directly (out = patches^T @ W + b): no wrapper-side HBM transpose.
    o_ref[0] = (lax.dot_general(
        p_ref[0].astype(jnp.bfloat16), w_ref[...],
        dimension_numbers=(((0,), (0,)), ((), ())),
        preferred_element_type=jnp.float32) + b_ref[...])


def patch_embed(patches, w_bf16, bias):
    """(B, K, T) patches x (K, D) weight -> (B, T, D), gridded over (batch, token tiles)."""
    B, K, T = patches.shape
    D = w_bf16.shape[1]
    tT = _token_tile(T)
    return pl.pallas_call(
        _patch_embed_kernel,
        grid=(B, T // tT),
        in_specs=[pl.BlockSpec((1, K, tT), lambda b, t: (b, 0, t)),
                  pl.BlockSpec((K, D), lambda b, t: (0, 0)),
                  pl.BlockSpec((1, D), lambda b, t: (0, 0))],
        out_specs=pl.BlockSpec((1, tT, D), lambda b, t: (b, t, 0)),
        out_shape=jax.ShapeDtypeStruct((B, T, D), jnp.float32),
        compiler_params=pltpu.CompilerParams(
            dimension_semantics=("parallel", "parallel")),
    )(patches, w_bf16, bias.reshape(1, D).astype(jnp.float32))


def _ln_linear_kernel(x_ref, g_ref, b_ref, w_ref, wb_ref, o_ref, *, eps):
    h = _layernorm(x_ref[...], g_ref[...], b_ref[...], eps)
    o_ref[...] = (jnp.dot(h.astype(jnp.bfloat16), w_ref[...],
                          preferred_element_type=jnp.float32) + wb_ref[...])


def ln_linear(x, g, b, w_bf16, wb, eps=1e-5):
    """Fused LayerNorm + Linear (mlp_head), row-tiled, lane-dense output slab."""
    M, D = x.shape
    N = w_bf16.shape[1]
    tm = _row_tile(M)
    return pl.pallas_call(
        functools.partial(_ln_linear_kernel, eps=eps),
        grid=(M // tm,),
        in_specs=[pl.BlockSpec((tm, D), lambda i: (i, 0)),
                  pl.BlockSpec((1, D), lambda i: (0, 0)),
                  pl.BlockSpec((1, D), lambda i: (0, 0)),
                  pl.BlockSpec((D, N), lambda i: (0, 0)),
                  pl.BlockSpec((1, N), lambda i: (0, 0))],
        out_specs=pl.BlockSpec((tm, N), lambda i: (i, 0)),
        out_shape=jax.ShapeDtypeStruct((M, N), jnp.float32),
        compiler_params=pltpu.CompilerParams(dimension_semantics=("parallel",)),
    )(x, g.reshape(1, D), b.reshape(1, D), w_bf16, wb.reshape(1, N).astype(jnp.float32))


def _encoder_block_kernel(x_ref, ln1_g, ln1_b, qkv_w, proj_w, proj_b,
                          ln2_g, ln2_b, fc1_w, fc1_b, fc2_w, fc2_b,
                          o_ref, attn_buf, *, num_heads, eps):
    """One full DEncoderBlock for a block of Bb batch elements, entirely resident in VMEM.

    qkv_w : (D, 3D) bf16 with the q columns pre-scaled by head_dim**-0.5 (trace-time fold)
    proj_w: (D, D)  bf16
    Batch elements are folded into the matmul row dimension (Bb*N rows) so the big LN1/qkv,
    proj and MLP matmuls fill the MXU; only the small per-head (N,N) score and p@v matmuls
    loop over heads, writing head outputs into the attn_buf VMEM scratch slab.
    """
    f32, bf16 = jnp.float32, jnp.bfloat16
    Bb, N, D = x_ref.shape
    Hd = D // num_heads

    x = x_ref[...].reshape(Bb * N, D)                             # (Bb*N, D) f32

    # ---- attention branch: x + proj(attn(LN1(x))) ----
    x1 = _layernorm(x, ln1_g[...], ln1_b[...], eps).astype(bf16)
    qkv = jnp.dot(x1, qkv_w[...], preferred_element_type=f32)     # one full-width matmul
    qkv = qkv.reshape(Bb, N, 3 * D)
    # TODO(synk): for large num_heads convert this unrolled loop to lax.fori_loop to bound
    # live ranges; with the batched qkv layout only the small (N,N) matmuls live per head.
    for h in range(num_heads):
        q = qkv[:, :, h * Hd:(h + 1) * Hd].astype(bf16)           # scale already folded
        k = qkv[:, :, D + h * Hd:D + (h + 1) * Hd].astype(bf16)
        v = qkv[:, :, 2 * D + h * Hd:2 * D + (h + 1) * Hd].astype(bf16)
        s = jnp.einsum('bnd,bmd->bnm', q, k, preferred_element_type=f32)   # (Bb, N, N)
        e = jnp.exp(s - jnp.max(s, axis=-1, keepdims=True))
        p = e * pl.reciprocal(jnp.sum(e, axis=-1, keepdims=True), approx=True)
        attn_buf[:, :, h * Hd:(h + 1) * Hd] = jnp.einsum(
            'bnm,bmd->bnd', p.astype(bf16), v, preferred_element_type=f32)
    o = attn_buf[...].reshape(Bb * N, D).astype(bf16)
    x = x + jnp.dot(o, proj_w[...], preferred_element_type=f32) + proj_b[...]

    # ---- MLP branch: x + fc2(GELU(fc1(LN2(x)))) ----
    x2 = _layernorm(x, ln2_g[...], ln2_b[...], eps).astype(bf16)
    h1 = jnp.dot(x2, fc1_w[...], preferred_element_type=f32) + fc1_b[...]
    h2 = jnp.dot(_gelu_tanh(h1).astype(bf16), fc2_w[...],
                 preferred_element_type=f32) + fc2_b[...]
    o_ref[...] = (x + h2).reshape(Bb, N, D)


def encoder_block(tokens, bp, num_heads, bb, eps=1e-5):
    B, N, D = tokens.shape
    hid = bp["fc1_w"].shape[1]

    def const(shape):
        nd = len(shape)
        # Constant block index across the batch grid -> never re-DMA'd; single-buffer it
        # (halves weight VMEM vs the default double buffer; matters on v7x's 64 MiB VMEM).
        return pl.BlockSpec(shape, lambda *_: (0,) * nd, pipeline_mode=pl.Buffered(1))

    return pl.pallas_call(
        functools.partial(_encoder_block_kernel, num_heads=num_heads, eps=eps),
        grid=(B // bb,),
        in_specs=[pl.BlockSpec((bb, N, D), lambda i: (i, 0, 0)),
                  const((1, D)), const((1, D)),
                  const((D, 3 * D)),
                  const((D, D)), const((1, D)),
                  const((1, D)), const((1, D)),
                  const((D, hid)), const((1, hid)),
                  const((hid, D)), const((1, D))],
        out_specs=pl.BlockSpec((bb, N, D), lambda i: (i, 0, 0)),
        out_shape=jax.ShapeDtypeStruct((B, N, D), jnp.float32),
        scratch_shapes=[pltpu.VMEM((bb, N, D), jnp.float32)],
        compiler_params=pltpu.CompilerParams(
            dimension_semantics=("parallel",),
            vmem_limit_bytes=_block_vmem_limit_bytes(bb, N, D, hid)),
    )(tokens, bp["ln1_g"], bp["ln1_b"], bp["qkv_w"], bp["proj_w"], bp["proj_b"],
      bp["ln2_g"], bp["ln2_b"], bp["fc1_w"], bp["fc1_b"], bp["fc2_w"], bp["fc2_b"])


# -----------------------------------------------------------------------------
# Model glue
# -----------------------------------------------------------------------------
def _prep_block_params(p, dim, num_heads):
    """Cast MXU operands to bf16 and fold the attention scale Hd**-0.5 into the q weight
    columns (constant-folded under jit).  The zero qkv bias (qkv_bias=False) is dropped."""
    scale = (dim // num_heads) ** -0.5
    qkv_w = p["qkv_w"].at[:, :dim].multiply(scale)     # q columns pre-scaled
    return dict(
        ln1_g=p["ln1_g"].reshape(1, dim), ln1_b=p["ln1_b"].reshape(1, dim),
        qkv_w=qkv_w.astype(jnp.bfloat16),
        proj_w=p["proj_w"].astype(jnp.bfloat16),
        proj_b=p["proj_b"].reshape(1, dim),
        ln2_g=p["ln2_g"].reshape(1, dim), ln2_b=p["ln2_b"].reshape(1, dim),
        fc1_w=p["fc1_w"].astype(jnp.bfloat16), fc1_b=p["fc1_b"].reshape(1, -1),
        fc2_w=p["fc2_w"].astype(jnp.bfloat16), fc2_b=p["fc2_b"].reshape(1, dim))


def classify(x, params, cfg):
    B = x.shape[0]
    dim, H = cfg["dim"], cfg["num_heads"]
    ksz, stride, pad = cfg["ksz"], cfg["stride"], cfg["pad"]

    # Strided-conv patch embedding lowered to im2col + in-kernel contraction: a single XLA
    # patch-extraction op, features flattened in (C, kh, kw) order (== Conv2d weight
    # flattening).  The (B, K, T) layout is read directly by the kernel (no HBM transpose).
    patches = lax.conv_general_dilated_patches(
        x, filter_shape=(ksz, ksz), window_strides=(stride, stride),
        padding=((pad, pad), (pad, pad)))            # (B, C*ksz*ksz, oh, ow)
    K = patches.shape[1]
    T = patches.shape[2] * patches.shape[3]
    patches = patches.reshape(B, K, T)

    emb = patch_embed(patches, params["patch_w"].astype(jnp.bfloat16), params["patch_b"])

    cls = jnp.broadcast_to(params["cls_token"], (B, 1, dim))
    tokens = jnp.concatenate([cls, emb], axis=1) + params["pos_emb"][None, :T + 1, :]
    # emb_dropout / attn_drop / proj_drop / mlp dropout are all p=0 -> identity.

    bb = _pick_batch_block(B, T + 1)
    for bp in params["blocks"]:
        tokens = encoder_block(tokens, _prep_block_params(bp, dim, H), H, bb)

    body = tokens[:, 1:, :].reshape(B * T, dim)      # drop cls token

    # mlp_head = LayerNorm + Linear(dim, 1), fused; the width-1 output is padded to a
    # lane-dense 128-wide slab (column 0 holds the logit) and sliced back here.
    NP = 128
    head_w = jnp.pad(params["head_w"], ((0, 0), (0, NP - params["head_w"].shape[1])))
    head_b = jnp.pad(params["head_b"], (0, NP - params["head_b"].shape[0]))
    logits = ln_linear(body, params["head_ln_g"], params["head_ln_b"],
                       head_w.astype(jnp.bfloat16), head_b)[:, :1]
    return logits.reshape(B, T, 1)
    # final_sigmoid is defined in the reference but never applied in forward().


def init_params(key, cfg):
    C, dim, ksz = cfg["in_channels"], cfg["dim"], cfg["ksz"]
    hid = dim * 4
    T = cfg["token_num"]

    def nrm(k, shape, std=0.02):
        return std * jax.random.normal(k, shape, dtype=jnp.float32)

    keys = iter(jax.random.split(key, 8 + 4 * cfg["blocks"]))
    params = {
        "patch_w": nrm(next(keys), (C * ksz * ksz, dim)),   # Conv2d weight (dim,C,k,k) flattened+transposed
        "patch_b": jnp.zeros((dim,), jnp.float32),
        "cls_token": nrm(next(keys), (1, 1, dim)),
        "pos_emb": jnp.asarray(
            get_2d_sincos_pos_embed(dim, int(T ** 0.5), cls_token=True, extra_tokens=1),
            dtype=jnp.float32),
        "head_ln_g": jnp.ones((dim,), jnp.float32),
        "head_ln_b": jnp.zeros((dim,), jnp.float32),
        # NOTE: the reference zero-inits the head (-> all-zero logits); small random
        # weights are used instead so the kernels exercise non-trivial compute.
        "head_w": nrm(next(keys), (dim, 1)),
        "head_b": jnp.zeros((1,), jnp.float32),
        "blocks": [],
    }
    for _ in range(cfg["blocks"]):
        params["blocks"].append({
            "ln1_g": jnp.ones((dim,), jnp.float32),
            "ln1_b": jnp.zeros((dim,), jnp.float32),
            "ln2_g": jnp.ones((dim,), jnp.float32),
            "ln2_b": jnp.zeros((dim,), jnp.float32),
            "qkv_w": nrm(next(keys), (dim, 3 * dim)),        # qkv_bias=False -> no bias param
            "proj_w": nrm(next(keys), (dim, dim)),
            "proj_b": jnp.zeros((dim,), jnp.float32),
            "fc1_w": nrm(next(keys), (dim, hid)),
            "fc1_b": jnp.zeros((hid,), jnp.float32),
            "fc2_w": nrm(next(keys), (hid, dim)),
            "fc2_b": jnp.zeros((dim,), jnp.float32),
        })
    return params


# -----------------------------------------------------------------------------
# Pure-JAX (XLA) reference forward, for an in-script numerical cross-check.
# -----------------------------------------------------------------------------
def reference_classify(x, params, cfg):
    B = x.shape[0]
    dim, H = cfg["dim"], cfg["num_heads"]
    Hd = dim // H
    C, ksz, stride, pad = cfg["in_channels"], cfg["ksz"], cfg["stride"], cfg["pad"]

    w_conv = params["patch_w"].T.reshape(dim, C, ksz, ksz)          # PyTorch OIHW layout
    y = lax.conv_general_dilated(x, w_conv, (stride, stride),
                                 ((pad, pad), (pad, pad)),
                                 dimension_numbers=("NCHW", "OIHW", "NCHW"))
    y = y + params["patch_b"][None, :, None, None]
    T = y.shape[2] * y.shape[3]
    emb = y.reshape(B, dim, T).transpose(0, 2, 1)                   # b c h w -> b (h w) c

    cls = jnp.broadcast_to(params["cls_token"], (B, 1, dim))
    t = jnp.concatenate([cls, emb], axis=1) + params["pos_emb"][None, :T + 1, :]

    def ln(v, g, b):
        mu = v.mean(-1, keepdims=True)
        var = ((v - mu) ** 2).mean(-1, keepdims=True)
        return (v - mu) / jnp.sqrt(var + 1e-5) * g + b

    for p in params["blocks"]:
        x1 = ln(t, p["ln1_g"], p["ln1_b"])
        qkv = (x1 @ p["qkv_w"]).reshape(B, -1, 3, H, Hd).transpose(2, 0, 3, 1, 4)
        q, k, v = qkv[0], qkv[1], qkv[2]                            # (B, H, N, Hd)
        s = (q * Hd ** -0.5) @ k.transpose(0, 1, 3, 2)
        a = jax.nn.softmax(s, axis=-1)
        o = (a @ v).transpose(0, 2, 1, 3).reshape(B, -1, dim)
        t = t + o @ p["proj_w"] + p["proj_b"]
        x2 = ln(t, p["ln2_g"], p["ln2_b"])
        h = jax.nn.gelu(x2 @ p["fc1_w"] + p["fc1_b"], approximate=False)
        t = t + h @ p["fc2_w"] + p["fc2_b"]

    body = ln(t[:, 1:, :], params["head_ln_g"], params["head_ln_b"])
    return body @ params["head_w"] + params["head_b"]               # (B, T, 1)


if __name__ == "__main__":
    # Small config consistent with ViTDiscriminator's constraints:
    #   image_size % patch_size == 0, dim % num_heads == 0, dim % 4 == 0 (sincos)
    batch = 2
    in_channels = 3
    patch_size = 4
    extend_size = 1
    image_size = 16
    dim = 64
    num_heads = 4
    blocks = 2

    cfg = dict(
        in_channels=in_channels,
        dim=dim,
        num_heads=num_heads,
        blocks=blocks,
        ksz=patch_size + 2 * extend_size,            # 6
        stride=patch_size,                           # 4
        pad=extend_size,                             # 1
        token_num=(image_size // patch_size) ** 2,   # 16
    )

    key = jax.random.PRNGKey(0)
    pkey, xkey = jax.random.split(key)
    params = init_params(pkey, cfg)
    x = jax.random.normal(xkey, (batch, in_channels, image_size, image_size), dtype=jnp.float32)

    classify_fn = jax.jit(functools.partial(classify, params=params, cfg=cfg))

    def forward(a, b=None):
        # matches ViTDiscriminator.forward(x, y=None) -> (classify(x), classify(y) or None)
        return classify_fn(a), (classify_fn(b) if b is not None else None)

    logits, other = forward(x)
    logits = jax.block_until_ready(logits)

    ref = jax.block_until_ready(
        jax.jit(functools.partial(reference_classify, params=params, cfg=cfg))(x))

    assert logits.shape == (batch, cfg["token_num"], 1)
    assert other is None
    assert bool(jnp.all(jnp.isfinite(logits)))
    # Kernel path uses bf16 MXU operands (f32 accumulation) + tanh GELU; generous
    # tolerance vs the f32 exact-erf XLA reference.
    assert float(jnp.max(jnp.abs(logits - ref))) < 7.5e-2
    print("KERNEL_OK")
</pallas_src>

<mosaic_0001>
module attributes {stable_mosaic.version = 11 : i64} {
  func.func @_patch_embed_kernel(%arg0: i32, %arg1: i32, %arg2: memref<1x108x16xf32, #tpu.memory_space<vmem>>, %arg3: memref<108x64xbf16, #tpu.memory_space<vmem>>, %arg4: memref<1x64xf32, #tpu.memory_space<vmem>>, %arg5: memref<1x16x64xf32, #tpu.memory_space<vmem>>) attributes {dimension_semantics = [#tpu.dimension_semantics<parallel>, #tpu.dimension_semantics<parallel>], iteration_bounds = array<i64: 2, 1>, scalar_prefetch = 0 : i64, scratch_operands = 0 : i64, tpu.core_type = #tpu.core_type<tc>, window_params = [{transform_indices = @transform_0, window_bounds = array<i64: 1, 108, 16>}, {pipeline_mode = #tpu.pipeline_mode<synchronous>, transform_indices = @transform_1, window_bounds = array<i64: 108, 64>}, {pipeline_mode = #tpu.pipeline_mode<synchronous>, transform_indices = @transform_2, window_bounds = array<i64: 1, 64>}, {transform_indices = @transform_3, window_bounds = array<i64: 1, 16, 64>}]} {
    %c0 = arith.constant 0 : index
    %c0_0 = arith.constant 0 : index
    %c0_1 = arith.constant 0 : index
    %0 = vector.load %arg2[%c0, %c0_0, %c0_1] : memref<1x108x16xf32, #tpu.memory_space<vmem>>, vector<1x108x16xf32>
    %1 = vector.shape_cast %0 : vector<1x108x16xf32> to vector<108x16xf32>
    %2 = arith.truncf %1 : vector<108x16xf32> to vector<108x16xbf16>
    %c0_2 = arith.constant 0 : index
    %c0_3 = arith.constant 0 : index
    %3 = vector.load %arg3[%c0_2, %c0_3] : memref<108x64xbf16, #tpu.memory_space<vmem>>, vector<108x64xbf16>
    %cst = arith.constant dense<0.000000e+00> : vector<16x64xf32>
    %4 = tpu.matmul %2, %3, %cst {dimension_numbers = #tpu.dot_dimension_numbers<[0], [0], [1], [1], [0, 1, 1, 1], [], []>} : vector<108x16xbf16>, vector<108x64xbf16>, vector<16x64xf32> -> vector<16x64xf32>
    %c0_4 = arith.constant 0 : index
    %c0_5 = arith.constant 0 : index
    %5 = vector.load %arg4[%c0_4, %c0_5] : memref<1x64xf32, #tpu.memory_space<vmem>>, vector<1x64xf32>
    %6 = vector.broadcast %5 : vector<1x64xf32> to vector<16x64xf32>
    %7 = arith.addf %4, %6 : vector<16x64xf32>
    %c0_6 = arith.constant 0 : index
    %c0_7 = arith.constant 0 : index
    %c0_8 = arith.constant 0 : index
    %8 = vector.load %arg5[%c0_6, %c0_7, %c0_8] : memref<1x16x64xf32, #tpu.memory_space<vmem>>, vector<1x16x64xf32>
    %9 = vector.shape_cast %8 : vector<1x16x64xf32> to vector<16x64xf32>
    %10 = vector.shape_cast %7 : vector<16x64xf32> to vector<1x16x64xf32>
    tpu.vector_store %arg5[%c0_6, %c0_7, %c0_8], %10 {strides = array<i32>} : memref<1x16x64xf32, #tpu.memory_space<vmem>>, vector<1x16x64xf32>,
    return
  }
  func.func @transform_0(%arg0: i32, %arg1: i32) -> (i32, i32, i32) {
    %c0_i32 = arith.constant 0 : i32
    %c0_i32_0 = arith.constant 0 : i32
    return %arg0, %c0_i32, %arg1 : i32, i32, i32
  }
  func.func @transform_1(%arg0: i32, %arg1: i32) -> (i32, i32) {
    %c0_i32 = arith.constant 0 : i32
    %c0_i32_0 = arith.constant 0 : i32
    %c0_i32_1 = arith.constant 0 : i32
    return %c0_i32, %c0_i32_0 : i32, i32
  }
  func.func @transform_2(%arg0: i32, %arg1: i32) -> (i32, i32) {
    %c0_i32 = arith.constant 0 : i32
    %c0_i32_0 = arith.constant 0 : i32
    %c0_i32_1 = arith.constant 0 : i32
    return %c0_i32, %c0_i32_0 : i32, i32
  }
  func.func @transform_3(%arg0: i32, %arg1: i32) -> (i32, i32, i32) {
    %c0_i32 = arith.constant 0 : i32
    %c0_i32_0 = arith.constant 0 : i32
    return %arg0, %arg1, %c0_i32 : i32, i32, i32
  }
}

module attributes {stable_mosaic.version = 11 : i64} {
  func.func @_encoder_block_kernel(%arg0: i32, %arg1: memref<1x17x64xf32, #tpu.memory_space<vmem>>, %arg2: memref<1x64xf32, #tpu.memory_space<vmem>>, %arg3: memref<1x64xf32, #tpu.memory_space<vmem>>, %arg4: memref<64x192xbf16, #tpu.memory_space<vmem>>, %arg5: memref<64x64xbf16, #tpu.memory_space<vmem>>, %arg6: memref<1x64xf32, #tpu.memory_space<vmem>>, %arg7: memref<1x64xf32, #tpu.memory_space<vmem>>, %arg8: memref<1x64xf32, #tpu.memory_space<vmem>>, %arg9: memref<64x256xbf16, #tpu.memory_space<vmem>>, %arg10: memref<1x256xf32, #tpu.memory_space<vmem>>, %arg11: memref<256x64xbf16, #tpu.memory_space<vmem>>, %arg12: memref<1x64xf32, #tpu.memory_space<vmem>>, %arg13: memref<1x17x64xf32, #tpu.memory_space<vmem>>, %arg14: memref<1x17x64xf32, #tpu.memory_space<vmem>>) attributes {dimension_semantics = [#tpu.dimension_semantics<parallel>], iteration_bounds = array<i64: 2>, scalar_prefetch = 0 : i64, scratch_operands = 1 : i64, tpu.core_type = #tpu.core_type<tc>, window_params = [{transform_indices = @transform_0, window_bounds = array<i64: 1, 17, 64>}, {pipeline_mode = #tpu.pipeline_mode<synchronous>, transform_indices = @transform_1, window_bounds = array<i64: 1, 64>}, {pipeline_mode = #tpu.pipeline_mode<synchronous>, transform_indices = @transform_2, window_bounds = array<i64: 1, 64>}, {pipeline_mode = #tpu.pipeline_mode<synchronous>, transform_indices = @transform_3, window_bounds = array<i64: 64, 192>}, {pipeline_mode = #tpu.pipeline_mode<synchronous>, transform_indices = @transform_4, window_bounds = array<i64: 64, 64>}, {pipeline_mode = #tpu.pipeline_mode<synchronous>, transform_indices = @transform_5, window_bounds = array<i64: 1, 64>}, {pipeline_mode = #tpu.pipeline_mode<synchronous>, transform_indices = @transform_6, window_bounds = array<i64: 1, 64>}, {pipeline_mode = #tpu.pipeline_mode<synchronous>, transform_indices = @transform_7, window_bounds = array<i64: 1, 64>}, {pipeline_mode = #tpu.pipeline_mode<synchronous>, transform_indices = @transform_8, window_bounds = array<i64: 64, 256>}, {pipeline_mode = #tpu.pipeline_mode<synchronous>, transform_indices = @transform_9, window_bounds = array<i64: 1, 256>}, {pipeline_mode = #tpu.pipeline_mode<synchronous>, transform_indices = @transform_10, window_bounds = array<i64: 256, 64>}, {pipeline_mode = #tpu.pipeline_mode<synchronous>, transform_indices = @transform_11, window_bounds = array<i64: 1, 64>}, {transform_indices = @transform_12, window_bounds = array<i64: 1, 17, 64>}]} {
    %c0 = arith.constant 0 : index
    %c0_0 = arith.constant 0 : index
    %c0_1 = arith.constant 0 : index
    %0 = vector.load %arg1[%c0, %c0_0, %c0_1] : memref<1x17x64xf32, #tpu.memory_space<vmem>>, vector<1x17x64xf32>
    %1 = vector.shape_cast %0 : vector<1x17x64xf32> to vector<17x64xf32>
    %c0_2 = arith.constant 0 : index
    %c0_3 = arith.constant 0 : index
    %2 = vector.load %arg2[%c0_2, %c0_3] : memref<1x64xf32, #tpu.memory_space<vmem>>, vector<1x64xf32>
    %c0_4 = arith.constant 0 : index
    %c0_5 = arith.constant 0 : index
    %3 = vector.load %arg3[%c0_4, %c0_5] : memref<1x64xf32, #tpu.memory_space<vmem>>, vector<1x64xf32>
    %cst = arith.constant dense<0.000000e+00> : vector<17xf32>
    %4 = vector.multi_reduction <add>, %1, %cst [1] : vector<17x64xf32> to vector<17xf32>
    %5 = vector.shape_cast %4 : vector<17xf32> to vector<17x1xf32>
    %cst_6 = arith.constant 6.400000e+01 : f32
    %6 = vector.broadcast %cst_6 : f32 to vector<17x1xf32>
    %7 = arith.divf %5, %6 : vector<17x1xf32>
    %8 = vector.broadcast %7 : vector<17x1xf32> to vector<17x64xf32>
    %9 = arith.subf %1, %8 : vector<17x64xf32>
    %10 = arith.mulf %9, %9 : vector<17x64xf32>
    %cst_7 = arith.constant dense<0.000000e+00> : vector<17xf32>
    %11 = vector.multi_reduction <add>, %10, %cst_7 [1] : vector<17x64xf32> to vector<17xf32>
    %12 = vector.shape_cast %11 : vector<17xf32> to vector<17x1xf32>
    %cst_8 = arith.constant 6.400000e+01 : f32
    %13 = vector.broadcast %cst_8 : f32 to vector<17x1xf32>
    %14 = arith.divf %12, %13 : vector<17x1xf32>
    %cst_9 = arith.constant 9.99999974E-6 : f32
    %15 = vector.broadcast %cst_9 : f32 to vector<17x1xf32>
    %16 = arith.addf %14, %15 : vector<17x1xf32>
    %17 = math.rsqrt %16 : vector<17x1xf32>
    %18 = vector.broadcast %17 : vector<17x1xf32> to vector<17x64xf32>
    %19 = arith.mulf %9, %18 : vector<17x64xf32>
    %20 = vector.broadcast %2 : vector<1x64xf32> to vector<17x64xf32>
    %21 = arith.mulf %19, %20 : vector<17x64xf32>
    %22 = vector.broadcast %3 : vector<1x64xf32> to vector<17x64xf32>
    %23 = arith.addf %21, %22 : vector<17x64xf32>
    %24 = arith.truncf %23 : vector<17x64xf32> to vector<17x64xbf16>
    %c0_10 = arith.constant 0 : index
    %c0_11 = arith.constant 0 : index
    %25 = vector.load %arg4[%c0_10, %c0_11] : memref<64x192xbf16, #tpu.memory_space<vmem>>, vector<64x192xbf16>
    %cst_12 = arith.constant dense<0.000000e+00> : vector<17x192xf32>
    %26 = tpu.matmul %24, %25, %cst_12 {dimension_numbers = #tpu.dot_dimension_numbers<[1], [0], [0], [1], [0, 0, 1, 1], [], []>} : vector<17x64xbf16>, vector<64x192xbf16>, vector<17x192xf32> -> vector<17x192xf32>
    %27 = vector.shape_cast %26 : vector<17x192xf32> to vector<1x17x192xf32>
    %28 = vector.extract_strided_slice %27 {offsets = [0, 0, 0], sizes = [1, 17, 16], strides = [1, 1, 1]} : vector<1x17x192xf32> to vector<1x17x16xf32>
    %29 = arith.truncf %28 : vector<1x17x16xf32> to vector<1x17x16xbf16>
    %30 = vector.extract_strided_slice %27 {offsets = [0, 0, 64], sizes = [1, 17, 16], strides = [1, 1, 1]} : vector<1x17x192xf32> to vector<1x17x16xf32>
    %31 = arith.truncf %30 : vector<1x17x16xf32> to vector<1x17x16xbf16>
    %32 = vector.extract_strided_slice %27 {offsets = [0, 0, 128], sizes = [1, 17, 16], strides = [1, 1, 1]} : vector<1x17x192xf32> to vector<1x17x16xf32>
    %33 = arith.truncf %32 : vector<1x17x16xf32> to vector<1x17x16xbf16>
    "tpu.trace_start"() <{level = 10 : i32, message = "bnd,bmd->bnm"}> : () -> ()
    %cst_13 = arith.constant dense<0.000000e+00> : vector<1x17x17xf32>
    %34 = tpu.matmul %29, %31, %cst_13 {dimension_numbers = #tpu.dot_dimension_numbers<[2], [2], [1], [1], [0, 0, 0, 1, 1, 1], [0], [0]>} : vector<1x17x16xbf16>, vector<1x17x16xbf16>, vector<1x17x17xf32> -> vector<1x17x17xf32>
    "tpu.trace_stop"() : () -> ()
    %cst_14 = arith.constant dense<0xFF800000> : vector<1x17xf32>
    %35 = vector.multi_reduction <maximumf>, %34, %cst_14 [2] : vector<1x17x17xf32> to vector<1x17xf32>
    %36 = vector.shape_cast %35 : vector<1x17xf32> to vector<1x17x1xf32>
    %37 = vector.broadcast %36 : vector<1x17x1xf32> to vector<1x17x17xf32>
    %38 = arith.subf %34, %37 : vector<1x17x17xf32>
    %39 = math.exp %38 : vector<1x17x17xf32>
    %cst_15 = arith.constant dense<0.000000e+00> : vector<1x17xf32>
    %40 = vector.multi_reduction <add>, %39, %cst_15 [2] : vector<1x17x17xf32> to vector<1x17xf32>
    %41 = vector.shape_cast %40 : vector<1x17xf32> to vector<1x17x1xf32>
    %42 = tpu.reciprocal %41 {approx = true} : vector<1x17x1xf32> -> vector<1x17x1xf32>
    %43 = vector.broadcast %42 : vector<1x17x1xf32> to vector<1x17x17xf32>
    %44 = arith.mulf %39, %43 : vector<1x17x17xf32>
    %45 = arith.truncf %44 : vector<1x17x17xf32> to vector<1x17x17xbf16>
    "tpu.trace_start"() <{level = 10 : i32, message = "bnm,bmd->bnd"}> : () -> ()
    %cst_16 = arith.constant dense<0.000000e+00> : vector<1x17x16xf32>
    %46 = tpu.matmul %45, %33, %cst_16 {dimension_numbers = #tpu.dot_dimension_numbers<[2], [1], [1], [2], [0, 0, 0, 1, 1, 2], [0], [0]>} : vector<1x17x17xbf16>, vector<1x17x16xbf16>, vector<1x17x16xf32> -> vector<1x17x16xf32>
    "tpu.trace_stop"() : () -> ()
    %c0_17 = arith.constant 0 : index
    %c0_18 = arith.constant 0 : index
    %c0_19 = arith.constant 0 : index
    %47 = vector.load %arg14[%c0_17, %c0_18, %c0_19] : memref<1x17x64xf32, #tpu.memory_space<vmem>>, vector<1x17x16xf32>
    tpu.vector_store %arg14[%c0_17, %c0_18, %c0_19], %46 {strides = array<i32>} : memref<1x17x64xf32, #tpu.memory_space<vmem>>, vector<1x17x16xf32>,
    %48 = vector.extract_strided_slice %27 {offsets = [0, 0, 16], sizes = [1, 17, 16], strides = [1, 1, 1]} : vector<1x17x192xf32> to vector<1x17x16xf32>
    %49 = arith.truncf %48 : vector<1x17x16xf32> to vector<1x17x16xbf16>
    %50 = vector.extract_strided_slice %27 {offsets = [0, 0, 80], sizes = [1, 17, 16], strides = [1, 1, 1]} : vector<1x17x192xf32> to vector<1x17x16xf32>
    %51 = arith.truncf %50 : vector<1x17x16xf32> to vector<1x17x16xbf16>
    %52 = vector.extract_strided_slice %27 {offsets = [0, 0, 144], sizes = [1, 17, 16], strides = [1, 1, 1]} : vector<1x17x192xf32> to vector<1x17x16xf32>
    %53 = arith.truncf %52 : vector<1x17x16xf32> to vector<1x17x16xbf16>
    "tpu.trace_start"() <{level = 10 : i32, message = "bnd,bmd->bnm"}> : () -> ()
    %cst_20 = arith.constant dense<0.000000e+00> : vector<1x17x17xf32>
    %54 = tpu.matmul %49, %51, %cst_20 {dimension_numbers = #tpu.dot_dimension_numbers<[2], [2], [1], [1], [0, 0, 0, 1, 1, 1], [0], [0]>} : vector<1x17x16xbf16>, vector<1x17x16xbf16>, vector<1x17x17xf32> -> vector<1x17x17xf32>
    "tpu.trace_stop"() : () -> ()
    %cst_21 = arith.constant dense<0xFF800000> : vector<1x17xf32>
    %55 = vector.multi_reduction <maximumf>, %54, %cst_21 [2] : vector<1x17x17xf32> to vector<1x17xf32>
    %56 = vector.shape_cast %55 : vector<1x17xf32> to vector<1x17x1xf32>
    %57 = vector.broadcast %56 : vector<1x17x1xf32> to vector<1x17x17xf32>
    %58 = arith.subf %54, %57 : vector<1x17x17xf32>
    %59 = math.exp %58 : vector<1x17x17xf32>
    %cst_22 = arith.constant dense<0.000000e+00> : vector<1x17xf32>
    %60 = vector.multi_reduction <add>, %59, %cst_22 [2] : vector<1x17x17xf32> to vector<1x17xf32>
    %61 = vector.shape_cast %60 : vector<1x17xf32> to vector<1x17x1xf32>
    %62 = tpu.reciprocal %61 {approx = true} : vector<1x17x1xf32> -> vector<1x17x1xf32>
    %63 = vector.broadcast %62 : vector<1x17x1xf32> to vector<1x17x17xf32>
    %64 = arith.mulf %59, %63 : vector<1x17x17xf32>
    %65 = arith.truncf %64 : vector<1x17x17xf32> to vector<1x17x17xbf16>
    "tpu.trace_start"() <{level = 10 : i32, message = "bnm,bmd->bnd"}> : () -> ()
    %cst_23 = arith.constant dense<0.000000e+00> : vector<1x17x16xf32>
    %66 = tpu.matmul %65, %53, %cst_23 {dimension_numbers = #tpu.dot_dimension_numbers<[2], [1], [1], [2], [0, 0, 0, 1, 1, 2], [0], [0]>} : vector<1x17x17xbf16>, vector<1x17x16xbf16>, vector<1x17x16xf32> -> vector<1x17x16xf32>
    "tpu.trace_stop"() : () -> ()
    %c0_24 = arith.constant 0 : index
    %c0_25 = arith.constant 0 : index
    %c16 = arith.constant 16 : index
    %67 = vector.load %arg14[%c0_24, %c0_25, %c16] : memref<1x17x64xf32, #tpu.memory_space<vmem>>, vector<1x17x16xf32>
    tpu.vector_store %arg14[%c0_24, %c0_25, %c16], %66 {strides = array<i32>} : memref<1x17x64xf32, #tpu.memory_space<vmem>>, vector<1x17x16xf32>,
    %68 = vector.extract_strided_slice %27 {offsets = [0, 0, 32], sizes = [1, 17, 16], strides = [1, 1, 1]} : vector<1x17x192xf32> to vector<1x17x16xf32>
    %69 = arith.truncf %68 : vector<1x17x16xf32> to vector<1x17x16xbf16>
    %70 = vector.extract_strided_slice %27 {offsets = [0, 0, 96], sizes = [1, 17, 16], strides = [1, 1, 1]} : vector<1x17x192xf32> to vector<1x17x16xf32>
    %71 = arith.truncf %70 : vector<1x17x16xf32> to vector<1x17x16xbf16>
    %72 = vector.extract_strided_slice %27 {offsets = [0, 0, 160], sizes = [1, 17, 16], strides = [1, 1, 1]} : vector<1x17x192xf32> to vector<1x17x16xf32>
    %73 = arith.truncf %72 : vector<1x17x16xf32> to vector<1x17x16xbf16>
    "tpu.trace_start"() <{level = 10 : i32, message = "bnd,bmd->bnm"}> : () -> ()
    %cst_26 = arith.constant dense<0.000000e+00> : vector<1x17x17xf32>
    %74 = tpu.matmul %69, %71, %cst_26 {dimension_numbers = #tpu.dot_dimension_numbers<[2], [2], [1], [1], [0, 0, 0, 1, 1, 1], [0], [0]>} : vector<1x17x16xbf16>, vector<1x17x16xbf16>, vector<1x17x17xf32> -> vector<1x17x17xf32>
    "tpu.trace_stop"() : () -> ()
    %cst_27 = arith.constant dense<0xFF800000> : vector<1x17xf32>
    %75 = vector.multi_reduction <maximumf>, %74, %cst_27 [2] : vector<1x17x17xf32> to vector<1x17xf32>
    %76 = vector.shape_cast %75 : vector<1x17xf32> to vector<1x17x1xf32>
    %77 = vector.broadcast %76 : vector<1x17x1xf32> to vector<1x17x17xf32>
    %78 = arith.subf %74, %77 : vector<1x17x17xf32>
    %79 = math.exp %78 : vector<1x17x17xf32>
    %cst_28 = arith.constant dense<0.000000e+00> : vector<1x17xf32>
    %80 = vector.multi_reduction <add>, %79, %cst_28 [2] : vector<1x17x17xf32> to vector<1x17xf32>
    %81 = vector.shape_cast %80 : vector<1x17xf32> to vector<1x17x1xf32>
    %82 = tpu.reciprocal %81 {approx = true} : vector<1x17x1xf32> -> vector<1x17x1xf32>
    %83 = vector.broadcast %82 : vector<1x17x1xf32> to vector<1x17x17xf32>
    %84 = arith.mulf %79, %83 : vector<1x17x17xf32>
    %85 = arith.truncf %84 : vector<1x17x17xf32> to vector<1x17x17xbf16>
    "tpu.trace_start"() <{level = 10 : i32, message = "bnm,bmd->bnd"}> : () -> ()
    %cst_29 = arith.constant dense<0.000000e+00> : vector<1x17x16xf32>
    %86 = tpu.matmul %85, %73, %cst_29 {dimension_numbers = #tpu.dot_dimension_numbers<[2], [1], [1], [2], [0, 0, 0, 1, 1, 2], [0], [0]>} : vector<1x17x17xbf16>, vector<1x17x16xbf16>, vector<1x17x16xf32> -> vector<1x17x16xf32>
    "tpu.trace_stop"() : () -> ()
    %c0_30 = arith.constant 0 : index
    %c0_31 = arith.constant 0 : index
    %c32 = arith.constant 32 : index
    %87 = vector.load %arg14[%c0_30, %c0_31, %c32] : memref<1x17x64xf32, #tpu.memory_space<vmem>>, vector<1x17x16xf32>
    tpu.vector_store %arg14[%c0_30, %c0_31, %c32], %86 {strides = array<i32>} : memref<1x17x64xf32, #tpu.memory_space<vmem>>, vector<1x17x16xf32>,
    %88 = vector.extract_strided_slice %27 {offsets = [0, 0, 48], sizes = [1, 17, 16], strides = [1, 1, 1]} : vector<1x17x192xf32> to vector<1x17x16xf32>
    %89 = arith.truncf %88 : vector<1x17x16xf32> to vector<1x17x16xbf16>
    %90 = vector.extract_strided_slice %27 {offsets = [0, 0, 112], sizes = [1, 17, 16], strides = [1, 1, 1]} : vector<1x17x192xf32> to vector<1x17x16xf32>
    %91 = arith.truncf %90 : vector<1x17x16xf32> to vector<1x17x16xbf16>
    %92 = vector.extract_strided_slice %27 {offsets = [0, 0, 176], sizes = [1, 17, 16], strides = [1, 1, 1]} : vector<1x17x192xf32> to vector<1x17x16xf32>
    %93 = arith.truncf %92 : vector<1x17x16xf32> to vector<1x17x16xbf16>
    "tpu.trace_start"() <{level = 10 : i32, message = "bnd,bmd->bnm"}> : () -> ()
    %cst_32 = arith.constant dense<0.000000e+00> : vector<1x17x17xf32>
    %94 = tpu.matmul %89, %91, %cst_32 {dimension_numbers = #tpu.dot_dimension_numbers<[2], [2], [1], [1], [0, 0, 0, 1, 1, 1], [0], [0]>} : vector<1x17x16xbf16>, vector<1x17x16xbf16>, vector<1x17x17xf32> -> vector<1x17x17xf32>
    "tpu.trace_stop"() : () -> ()
    %cst_33 = arith.constant dense<0xFF800000> : vector<1x17xf32>
    %95 = vector.multi_reduction <maximumf>, %94, %cst_33 [2] : vector<1x17x17xf32> to vector<1x17xf32>
    %96 = vector.shape_cast %95 : vector<1x17xf32> to vector<1x17x1xf32>
    %97 = vector.broadcast %96 : vector<1x17x1xf32> to vector<1x17x17xf32>
    %98 = arith.subf %94, %97 : vector<1x17x17xf32>
    %99 = math.exp %98 : vector<1x17x17xf32>
    %cst_34 = arith.constant dense<0.000000e+00> : vector<1x17xf32>
    %100 = vector.multi_reduction <add>, %99, %cst_34 [2] : vector<1x17x17xf32> to vector<1x17xf32>
    %101 = vector.shape_cast %100 : vector<1x17xf32> to vector<1x17x1xf32>
    %102 = tpu.reciprocal %101 {approx = true} : vector<1x17x1xf32> -> vector<1x17x1xf32>
    %103 = vector.broadcast %102 : vector<1x17x1xf32> to vector<1x17x17xf32>
    %104 = arith.mulf %99, %103 : vector<1x17x17xf32>
    %105 = arith.truncf %104 : vector<1x17x17xf32> to vector<1x17x17xbf16>
    "tpu.trace_start"() <{level = 10 : i32, message = "bnm,bmd->bnd"}> : () -> ()
    %cst_35 = arith.constant dense<0.000000e+00> : vector<1x17x16xf32>
    %106 = tpu.matmul %105, %93, %cst_35 {dimension_numbers = #tpu.dot_dimension_numbers<[2], [1], [1], [2], [0, 0, 0, 1, 1, 2], [0], [0]>} : vector<1x17x17xbf16>, vector<1x17x16xbf16>, vector<1x17x16xf32> -> vector<1x17x16xf32>
    "tpu.trace_stop"() : () -> ()
    %c0_36 = arith.constant 0 : index
    %c0_37 = arith.constant 0 : index
    %c48 = arith.constant 48 : index
    %107 = vector.load %arg14[%c0_36, %c0_37, %c48] : memref<1x17x64xf32, #tpu.memory_space<vmem>>, vector<1x17x16xf32>
    tpu.vector_store %arg14[%c0_36, %c0_37, %c48], %106 {strides = array<i32>} : memref<1x17x64xf32, #tpu.memory_space<vmem>>, vector<1x17x16xf32>,
    %c0_38 = arith.constant 0 : index
    %c0_39 = arith.constant 0 : index
    %c0_40 = arith.constant 0 : index
    %108 = vector.load %arg14[%c0_38, %c0_39, %c0_40] : memref<1x17x64xf32, #tpu.memory_space<vmem>>, vector<1x17x64xf32>
    %109 = vector.shape_cast %108 : vector<1x17x64xf32> to vector<17x64xf32>
    %110 = arith.truncf %109 : vector<17x64xf32> to vector<17x64xbf16>
    %c0_41 = arith.constant 0 : index
    %c0_42 = arith.constant 0 : index
    %111 = vector.load %arg5[%c0_41, %c0_42] : memref<64x64xbf16, #tpu.memory_space<vmem>>, vector<64x64xbf16>
    %cst_43 = arith.constant dense<0.000000e+00> : vector<17x64xf32>
    %112 = tpu.matmul %110, %111, %cst_43 {dimension_numbers = #tpu.dot_dimension_numbers<[1], [0], [0], [1], [0, 0, 1, 1], [], []>} : vector<17x64xbf16>, vector<64x64xbf16>, vector<17x64xf32> -> vector<17x64xf32>
    %113 = arith.addf %1, %112 : vector<17x64xf32>
    %c0_44 = arith.constant 0 : index
    %c0_45 = arith.constant 0 : index
    %114 = vector.load %arg6[%c0_44, %c0_45] : memref<1x64xf32, #tpu.memory_space<vmem>>, vector<1x64xf32>
    %115 = vector.broadcast %114 : vector<1x64xf32> to vector<17x64xf32>
    %116 = arith.addf %113, %115 : vector<17x64xf32>
    %c0_46 = arith.constant 0 : index
    %c0_47 = arith.constant 0 : index
    %117 = vector.load %arg7[%c0_46, %c0_47] : memref<1x64xf32, #tpu.memory_space<vmem>>, vector<1x64xf32>
    %c0_48 = arith.constant 0 : index
    %c0_49 = arith.constant 0 : index
    %118 = vector.load %arg8[%c0_48, %c0_49] : memref<1x64xf32, #tpu.memory_space<vmem>>, vector<1x64xf32>
    %cst_50 = arith.constant dense<0.000000e+00> : vector<17xf32>
    %119 = vector.multi_reduction <add>, %116, %cst_50 [1] : vector<17x64xf32> to vector<17xf32>
    %120 = vector.shape_cast %119 : vector<17xf32> to vector<17x1xf32>
    %cst_51 = arith.constant 6.400000e+01 : f32
    %121 = vector.broadcast %cst_51 : f32 to vector<17x1xf32>
    %122 = arith.divf %120, %121 : vector<17x1xf32>
    %123 = vector.broadcast %122 : vector<17x1xf32> to vector<17x64xf32>
    %124 = arith.subf %116, %123 : vector<17x64xf32>
    %125 = arith.mulf %124, %124 : vector<17x64xf32>
    %cst_52 = arith.constant dense<0.000000e+00> : vector<17xf32>
    %126 = vector.multi_reduction <add>, %125, %cst_52 [1] : vector<17x64xf32> to vector<17xf32>
    %127 = vector.shape_cast %126 : vector<17xf32> to vector<17x1xf32>
    %cst_53 = arith.constant 6.400000e+01 : f32
    %128 = vector.broadcast %cst_53 : f32 to vector<17x1xf32>
    %129 = arith.divf %127, %128 : vector<17x1xf32>
    %cst_54 = arith.constant 9.99999974E-6 : f32
    %130 = vector.broadcast %cst_54 : f32 to vector<17x1xf32>
    %131 = arith.addf %129, %130 : vector<17x1xf32>
    %132 = math.rsqrt %131 : vector<17x1xf32>
    %133 = vector.broadcast %132 : vector<17x1xf32> to vector<17x64xf32>
    %134 = arith.mulf %124, %133 : vector<17x64xf32>
    %135 = vector.broadcast %117 : vector<1x64xf32> to vector<17x64xf32>
    %136 = arith.mulf %134, %135 : vector<17x64xf32>
    %137 = vector.broadcast %118 : vector<1x64xf32> to vector<17x64xf32>
    %138 = arith.addf %136, %137 : vector<17x64xf32>
    %139 = arith.truncf %138 : vector<17x64xf32> to vector<17x64xbf16>
    %c0_55 = arith.constant 0 : index
    %c0_56 = arith.constant 0 : index
    %140 = vector.load %arg9[%c0_55, %c0_56] : memref<64x256xbf16, #tpu.memory_space<vmem>>, vector<64x256xbf16>
    %cst_57 = arith.constant dense<0.000000e+00> : vector<17x256xf32>
    %141 = tpu.matmul %139, %140, %cst_57 {dimension_numbers = #tpu.dot_dimension_numbers<[1], [0], [0], [1], [0, 0, 1, 1], [], []>} : vector<17x64xbf16>, vector<64x256xbf16>, vector<17x256xf32> -> vector<17x256xf32>
    %c0_58 = arith.constant 0 : index
    %c0_59 = arith.constant 0 : index
    %142 = vector.load %arg10[%c0_58, %c0_59] : memref<1x256xf32, #tpu.memory_space<vmem>>, vector<1x256xf32>
    %143 = vector.broadcast %142 : vector<1x256xf32> to vector<17x256xf32>
    %144 = arith.addf %141, %143 : vector<17x256xf32>
    %cst_60 = arith.constant 5.000000e-01 : f32
    %145 = vector.broadcast %cst_60 : f32 to vector<17x256xf32>
    %146 = arith.mulf %145, %144 : vector<17x256xf32>
    %cst_61 = arith.constant 4.471500e-02 : f32
    %147 = vector.broadcast %cst_61 : f32 to vector<17x256xf32>
    %148 = arith.mulf %147, %144 : vector<17x256xf32>
    %149 = arith.mulf %148, %144 : vector<17x256xf32>
    %150 = arith.mulf %149, %144 : vector<17x256xf32>
    %151 = arith.addf %144, %150 : vector<17x256xf32>
    %cst_62 = arith.constant 0.797884583 : f32
    %152 = vector.broadcast %cst_62 : f32 to vector<17x256xf32>
    %153 = arith.mulf %152, %151 : vector<17x256xf32>
    %154 = math.tanh %153 : vector<17x256xf32>
    %cst_63 = arith.constant 1.000000e+00 : f32
    %155 = vector.broadcast %cst_63 : f32 to vector<17x256xf32>
    %156 = arith.addf %155, %154 : vector<17x256xf32>
    %157 = arith.mulf %146, %156 : vector<17x256xf32>
    %158 = arith.truncf %157 : vector<17x256xf32> to vector<17x256xbf16>
    %c0_64 = arith.constant 0 : index
    %c0_65 = arith.constant 0 : index
    %159 = vector.load %arg11[%c0_64, %c0_65] : memref<256x64xbf16, #tpu.memory_space<vmem>>, vector<256x64xbf16>
    %cst_66 = arith.constant dense<0.000000e+00> : vector<17x64xf32>
    %160 = tpu.matmul %158, %159, %cst_66 {dimension_numbers = #tpu.dot_dimension_numbers<[1], [0], [0], [1], [0, 0, 1, 1], [], []>} : vector<17x256xbf16>, vector<256x64xbf16>, vector<17x64xf32> -> vector<17x64xf32>
    %c0_67 = arith.constant 0 : index
    %c0_68 = arith.constant 0 : index
    %161 = vector.load %arg12[%c0_67, %c0_68] : memref<1x64xf32, #tpu.memory_space<vmem>>, vector<1x64xf32>
    %162 = vector.broadcast %161 : vector<1x64xf32> to vector<17x64xf32>
    %163 = arith.addf %160, %162 : vector<17x64xf32>
    %164 = arith.addf %116, %163 : vector<17x64xf32>
    %165 = vector.shape_cast %164 : vector<17x64xf32> to vector<1x17x64xf32>
    %c0_69 = arith.constant 0 : index
    %c0_70 = arith.constant 0 : index
    %c0_71 = arith.constant 0 : index
    %166 = vector.load %arg13[%c0_69, %c0_70, %c0_71] : memref<1x17x64xf32, #tpu.memory_space<vmem>>, vector<1x17x64xf32>
    tpu.vector_store %arg13[%c0_69, %c0_70, %c0_71], %165 {strides = array<i32>} : memref<1x17x64xf32, #tpu.memory_space<vmem>>, vector<1x17x64xf32>,
    return
  }
  func.func @transform_0(%arg0: i32) -> (i32, i32, i32) {
    %c0_i32 = arith.constant 0 : i32
    %c0_i32_0 = arith.constant 0 : i32
    %c0_i32_1 = arith.constant 0 : i32
    return %arg0, %c0_i32, %c0_i32_0 : i32, i32, i32
  }
  func.func @transform_1(%arg0: i32) -> (i32, i32) {
    %c0_i32 = arith.constant 0 : i32
    %c0_i32_0 = arith.constant 0 : i32
    %c0_i32_1 = arith.constant 0 : i32
    return %c0_i32, %c0_i32_0 : i32, i32
  }
  func.func @transform_2(%arg0: i32) -> (i32, i32) {
    %c0_i32 = arith.constant 0 : i32
    %c0_i32_0 = arith.constant 0 : i32
    %c0_i32_1 = arith.constant 0 : i32
    return %c0_i32, %c0_i32_0 : i32, i32
  }
  func.func @transform_3(%arg0: i32) -> (i32, i32) {
    %c0_i32 = arith.constant 0 : i32
    %c0_i32_0 = arith.constant 0 : i32
    %c0_i32_1 = arith.constant 0 : i32
    return %c0_i32, %c0_i32_0 : i32, i32
  }
  func.func @transform_4(%arg0: i32) -> (i32, i32) {
    %c0_i32 = arith.constant 0 : i32
    %c0_i32_0 = arith.constant 0 : i32
    %c0_i32_1 = arith.constant 0 : i32
    return %c0_i32, %c0_i32_0 : i32, i32
  }
  func.func @transform_5(%arg0: i32) -> (i32, i32) {
    %c0_i32 = arith.constant 0 : i32
    %c0_i32_0 = arith.constant 0 : i32
    %c0_i32_1 = arith.constant 0 : i32
    return %c0_i32, %c0_i32_0 : i32, i32
  }
  func.func @transform_6(%arg0: i32) -> (i32, i32) {
    %c0_i32 = arith.constant 0 : i32
    %c0_i32_0 = arith.constant 0 : i32
    %c0_i32_1 = arith.constant 0 : i32
    return %c0_i32, %c0_i32_0 : i32, i32
  }
  func.func @transform_7(%arg0: i32) -> (i32, i32) {
    %c0_i32 = arith.constant 0 : i32
    %c0_i32_0 = arith.constant 0 : i32
    %c0_i32_1 = arith.constant 0 : i32
    return %c0_i32, %c0_i32_0 : i32, i32
  }
  func.func @transform_8(%arg0: i32) -> (i32, i32) {
    %c0_i32 = arith.constant 0 : i32
    %c0_i32_0 = arith.constant 0 : i32
    %c0_i32_1 = arith.constant 0 : i32
    return %c0_i32, %c0_i32_0 : i32, i32
  }
  func.func @transform_9(%arg0: i32) -> (i32, i32) {
    %c0_i32 = arith.constant 0 : i32
    %c0_i32_0 = arith.constant 0 : i32
    %c0_i32_1 = arith.constant 0 : i32
    return %c0_i32, %c0_i32_0 : i32, i32
  }
  func.func @transform_10(%arg0: i32) -> (i32, i32) {
    %c0_i32 = arith.constant 0 : i32
    %c0_i32_0 = arith.constant 0 : i32
    %c0_i32_1 = arith.constant 0 : i32
    return %c0_i32, %c0_i32_0 : i32, i32
  }
  func.func @transform_11(%arg0: i32) -> (i32, i32) {
    %c0_i32 = arith.constant 0 : i32
    %c0_i32_0 = arith.constant 0 : i32
    %c0_i32_1 = arith.constant 0 : i32
    return %c0_i32, %c0_i32_0 : i32, i32
  }
  func.func @transform_12(%arg0: i32) -> (i32, i32, i32) {
    %c0_i32 = arith.constant 0 : i32
    %c0_i32_0 = arith.constant 0 : i32
    %c0_i32_1 = arith.constant 0 : i32
    return %arg0, %c0_i32, %c0_i32_0 : i32, i32, i32
  }
}

module attributes {stable_mosaic.version = 11 : i64} {
  func.func @_ln_linear_kernel(%arg0: i32, %arg1: memref<16x64xf32, #tpu.memory_space<vmem>>, %arg2: memref<1x64xf32, #tpu.memory_space<vmem>>, %arg3: memref<1x64xf32, #tpu.memory_space<vmem>>, %arg4: memref<64x128xbf16, #tpu.memory_space<vmem>>, %arg5: memref<1x128xf32, #tpu.memory_space<vmem>>, %arg6: memref<16x128xf32, #tpu.memory_space<vmem>>) attributes {dimension_semantics = [#tpu.dimension_semantics<parallel>], iteration_bounds = array<i64: 2>, scalar_prefetch = 0 : i64, scratch_operands = 0 : i64, tpu.core_type = #tpu.core_type<tc>, window_params = [{transform_indices = @transform_0, window_bounds = array<i64: 16, 64>}, {pipeline_mode = #tpu.pipeline_mode<synchronous>, transform_indices = @transform_1, window_bounds = array<i64: 1, 64>}, {pipeline_mode = #tpu.pipeline_mode<synchronous>, transform_indices = @transform_2, window_bounds = array<i64: 1, 64>}, {pipeline_mode = #tpu.pipeline_mode<synchronous>, transform_indices = @transform_3, window_bounds = array<i64: 64, 128>}, {pipeline_mode = #tpu.pipeline_mode<synchronous>, transform_indices = @transform_4, window_bounds = array<i64: 1, 128>}, {transform_indices = @transform_5, window_bounds = array<i64: 16, 128>}]} {
    %c0 = arith.constant 0 : index
    %c0_0 = arith.constant 0 : index
    %0 = vector.load %arg1[%c0, %c0_0] : memref<16x64xf32, #tpu.memory_space<vmem>>, vector<16x64xf32>
    %c0_1 = arith.constant 0 : index
    %c0_2 = arith.constant 0 : index
    %1 = vector.load %arg2[%c0_1, %c0_2] : memref<1x64xf32, #tpu.memory_space<vmem>>, vector<1x64xf32>
    %c0_3 = arith.constant 0 : index
    %c0_4 = arith.constant 0 : index
    %2 = vector.load %arg3[%c0_3, %c0_4] : memref<1x64xf32, #tpu.memory_space<vmem>>, vector<1x64xf32>
    %cst = arith.constant dense<0.000000e+00> : vector<16xf32>
    %3 = vector.multi_reduction <add>, %0, %cst [1] : vector<16x64xf32> to vector<16xf32>
    %4 = vector.shape_cast %3 : vector<16xf32> to vector<16x1xf32>
    %cst_5 = arith.constant 6.400000e+01 : f32
    %5 = vector.broadcast %cst_5 : f32 to vector<16x1xf32>
    %6 = arith.divf %4, %5 : vector<16x1xf32>
    %7 = vector.broadcast %6 : vector<16x1xf32> to vector<16x64xf32>
    %8 = arith.subf %0, %7 : vector<16x64xf32>
    %9 = arith.mulf %8, %8 : vector<16x64xf32>
    %cst_6 = arith.constant dense<0.000000e+00> : vector<16xf32>
    %10 = vector.multi_reduction <add>, %9, %cst_6 [1] : vector<16x64xf32> to vector<16xf32>
    %11 = vector.shape_cast %10 : vector<16xf32> to vector<16x1xf32>
    %cst_7 = arith.constant 6.400000e+01 : f32
    %12 = vector.broadcast %cst_7 : f32 to vector<16x1xf32>
    %13 = arith.divf %11, %12 : vector<16x1xf32>
    %cst_8 = arith.constant 9.99999974E-6 : f32
    %14 = vector.broadcast %cst_8 : f32 to vector<16x1xf32>
    %15 = arith.addf %13, %14 : vector<16x1xf32>
    %16 = math.rsqrt %15 : vector<16x1xf32>
    %17 = vector.broadcast %16 : vector<16x1xf32> to vector<16x64xf32>
    %18 = arith.mulf %8, %17 : vector<16x64xf32>
    %19 = vector.broadcast %1 : vector<1x64xf32> to vector<16x64xf32>
    %20 = arith.mulf %18, %19 : vector<16x64xf32>
    %21 = vector.broadcast %2 : vector<1x64xf32> to vector<16x64xf32>
    %22 = arith.addf %20, %21 : vector<16x64xf32>
    %23 = arith.truncf %22 : vector<16x64xf32> to vector<16x64xbf16>
    %c0_9 = arith.constant 0 : index
    %c0_10 = arith.constant 0 : index
    %24 = vector.load %arg4[%c0_9, %c0_10] : memref<64x128xbf16, #tpu.memory_space<vmem>>, vector<64x128xbf16>
    %cst_11 = arith.constant dense<0.000000e+00> : vector<16x128xf32>
    %25 = tpu.matmul %23, %24, %cst_11 {dimension_numbers = #tpu.dot_dimension_numbers<[1], [0], [0], [1], [0, 0, 1, 1], [], []>} : vector<16x64xbf16>, vector<64x128xbf16>, vector<16x128xf32> -> vector<16x128xf32>
    %c0_12 = arith.constant 0 : index
    %c0_13 = arith.constant 0 : index
    %26 = vector.load %arg5[%c0_12, %c0_13] : memref<1x128xf32, #tpu.memory_space<vmem>>, vector<1x128xf32>
    %27 = vector.broadcast %26 : vector<1x128xf32> to vector<16x128xf32>
    %28 = arith.addf %25, %27 : vector<16x128xf32>
    %c0_14 = arith.constant 0 : index
    %c0_15 = arith.constant 0 : index
    %29 = vector.load %arg6[%c0_14, %c0_15] : memref<16x128xf32, #tpu.memory_space<vmem>>, vector<16x128xf32>
    tpu.vector_store %arg6[%c0_14, %c0_15], %28 {strides = array<i32>} : memref<16x128xf32, #tpu.memory_space<vmem>>, vector<16x128xf32>,
    return
  }
  func.func @transform_0(%arg0: i32) -> (i32, i32) {
    %c0_i32 = arith.constant 0 : i32
    %c0_i32_0 = arith.constant 0 : i32
    return %arg0, %c0_i32 : i32, i32
  }
  func.func @transform_1(%arg0: i32) -> (i32, i32) {
    %c0_i32 = arith.constant 0 : i32
    %c0_i32_0 = arith.constant 0 : i32
    %c0_i32_1 = arith.constant 0 : i32
    return %c0_i32, %c0_i32_0 : i32, i32
  }
  func.func @transform_2(%arg0: i32) -> (i32, i32) {
    %c0_i32 = arith.constant 0 : i32
    %c0_i32_0 = arith.constant 0 : i32
    %c0_i32_1 = arith.constant 0 : i32
    return %c0_i32, %c0_i32_0 : i32, i32
  }
  func.func @transform_3(%arg0: i32) -> (i32, i32) {
    %c0_i32 = arith.constant 0 : i32
    %c0_i32_0 = arith.constant 0 : i32
    %c0_i32_1 = arith.constant 0 : i32
    return %c0_i32, %c0_i32_0 : i32, i32
  }
  func.func @transform_4(%arg0: i32) -> (i32, i32) {
    %c0_i32 = arith.constant 0 : i32
    %c0_i32_0 = arith.constant 0 : i32
    %c0_i32_1 = arith.constant 0 : i32
    return %c0_i32, %c0_i32_0 : i32, i32
  }
  func.func @transform_5(%arg0: i32) -> (i32, i32) {
    %c0_i32 = arith.constant 0 : i32
    %c0_i32_0 = arith.constant 0 : i32
    return %arg0, %c0_i32 : i32, i32
  }
}

</mosaic_0001>

<bundles_post_ra>
// kernel: classify.4
= control target key start
LH: loop header
LB: loop body
LE: loop exit
PB: predicated region body
PF: predicated region fallthrough
CT: control target
= control target key end

     0   :  { %s571_s12 = smov 0   ;;  %s573_s13 = smov 0   ;;  %s648_s0 = inlined_call_operand.vmem [shape: f32[2,108,16], index: 0, kind: input, shape index: {}]   ;;  %s649_s1 = inlined_call_operand.vmem [shape: bf16[108,64], index: 1, kind: input, shape index: {}]   ;;  %s650_s2 = inlined_call_operand.vmem [shape: f32[1,64], index: 2, kind: input, shape index: {}]   ;;  %s651_s3 = inlined_call_operand.vmem [shape: f32[2,16,64], index: 3, kind: output, shape index: {}]  }
   0x1   :  { %s575_s14 = smov 0  }
   0x2 LB: > { %s25_s15 = sadd.s32 1, %s543_s13  ;;  %p448_p0 = scmp.ge.s32.totalorder %s547_s14, 1  ;;  %s547_s14 = sphi %s575_s14, %s13_s14   ;;  %s543_s13 = sphi %s573_s13, %s653_s13   ;;  %s539_s12 = sphi %s571_s12, %s652_s12  }
   0x3   : > { %p27_p1 = scmp.ge.s32.totalorder %s25_s15, 2  ;;  %p156_p2 = scmp.lt.s32.totalorder %s547_s14, 3 }
   0x5   : > { %s655_s15 = smov (%p27_p1, %s25_s15), 0  ;;  %p157_p3 = pnand %p448_p0, %p156_p2 }
   0x6   : > { %p187_p4 = scmp.lt.s32.totalorder (!%p157_p3), %s539_s12, 1 }
   0x7   : > { %160 = sbr.rel (%p157_p3) target bundleno = 318 (0x13e), region = 32 }
   0xc   : > { %vm309_vm0 = vcmask 1045504   ;;  %v549_v0 = vmov 0.0   ;;  %v518_v1 = vld [vmem:[%s649_s1 + $0x30] sm:$0x3f]   ;;  %s657_s12 = smov (!%p187_p4, %s539_s12), 1  ;;  %v519_v3 = vld [vmem:[%s649_s1 + $0x28] sm:$0xff]  }
   0xd   : > { %472 = vmatprep.subr.bf16.mxu0 %v549_v0  ;;  %v311_v2 = vsel %vm309_vm0, %v518_v1, 0  ;;  %s490_s18 = smul.u32 112, %s657_s12  ;;  %vm550_vm1 = vmmov 0   ;;  %v520_v9 = vld [vmem:[%s649_s1 + $0x20] sm:$0xff]   ;;  %v521_v13 = vld [vmem:[%s649_s1 + $0x18] sm:$0xff]   ;;  %v522_v17 = vld [vmem:[%s649_s1 + $0x10] sm:$0xff]  }
   0xe   : > { %473 = vmatpush3.bf16.msra.mxu0 %v311_v2  ;;  %486 = vmatprep.mubr.msk.bf16.mxu0 %vm550_vm1, %v549_v0  ;;  %v523_v21 = vld [vmem:[%s649_s1 + $0x8] sm:$0xff]   ;;  %v524_v25 = vld [vmem:[%s649_s1] sm:$0xff]   ;;  %vm305_vm2 = vcmask 883712   ;;  %s463_s7 = sshll.u32 %s657_s12, 4  ;;  %vm354_vm3 = vcmask 523264  }
   0xf   : > { %474 = vmatprep.subr.bf16.mxu0 %v549_v0  ;;  %s601_s23 = scalar_lea.vmem %s648_s0, %s490_s18  ;;  %v452_v31 = vld [vmem:[%s650_s2] ss:$0 sm:$0xff]  ;;  %s203_s16 = scalar_lea.vmem %s651_s3, %s463_s7 }
  0x10   : > { %v206_v4 = vld [vmem:[%s601_s23] sm:$0xff]  ;;  %v207_v5 = vld [vmem:[%s601_s23 + $0x8] sm:$0xff]  ;;  %v208_v6 = vld [vmem:[%s601_s23 + $0x10] sm:$0xff] }
  0x11   : > { %v220_v7 = vpack.c.bf16 %v207_v5, %v206_v4  ;;  %v209_v8 = vld [vmem:[%s601_s23 + $0x18] sm:$0xff]  ;;  %v210_v11 = vld [vmem:[%s601_s23 + $0x20] sm:$0xff]  ;;  %v211_v12 = vld [vmem:[%s601_s23 + $0x28] sm:$0xff] }
  0x12   : > { %475 = vmatpush3.bf16.msra.mxu0 %v519_v3  ;;  %v221_v10 = vpack.c.bf16 %v209_v8, %v208_v6  ;;  %v222_v14 = vpack.c.bf16 %v211_v12, %v210_v11  ;;  %v212_v15 = vld [vmem:[%s601_s23 + $0x30] sm:$0xff]  ;;  %v213_v16 = vld [vmem:[%s601_s23 + $0x38] sm:$0xff]  ;;  %v214_v19 = vld [vmem:[%s601_s23 + $0x40] sm:$0xff] }
  0x13   : > { %476 = vmatprep.subr.bf16.mxu0 %v549_v0  ;;  %248 = vxpose.xlu0.c.b16.start [1/7] (short) (narrow) %v220_v7, 16  ;;  %v223_v18 = vpack.c.bf16 %v213_v16, %v212_v15  ;;  %v215_v20 = vld [vmem:[%s601_s23 + $0x48] sm:$0xff]  ;;  %v216_v23 = vld [vmem:[%s601_s23 + $0x50] sm:$0xff]  ;;  %v217_v24 = vld [vmem:[%s601_s23 + $0x58] sm:$0xff] }
  0x14   : > { %v224_v22 = vpack.c.bf16 %v215_v20, %v214_v19  ;;  %v225_v26 = vpack.c.bf16 %v217_v24, %v216_v23  ;;  %v218_v27 = vld [vmem:[%s601_s23 + $0x60] sm:$0xff]  ;;  %v219_v28 = vld [vmem:[%s601_s23 + $0x68] sm:$0xf] }
  0x15   : > { %v226_v29 = vpack.c.bf16 %v219_v28, %v218_v27 }
  0x16   : > { %477 = vmatpush3.bf16.msra.mxu0 %v520_v9 }
  0x17   : > { %478 = vmatprep.subr.bf16.mxu0 %v549_v0  ;;  %249 = vxpose.xlu0.c.b16.cont [2/7] (short) (narrow) %v221_v10, 16 }
  0x1a   : > { %479 = vmatpush3.bf16.msra.mxu0 %v521_v13 }
  0x1b   : > { %480 = vmatprep.subr.bf16.mxu0 %v549_v0  ;;  %250 = vxpose.xlu0.c.b16.cont [3/7] (short) (narrow) %v222_v14, 16 }
  0x1e   : > { %481 = vmatpush3.bf16.msra.mxu0 %v522_v17 }
  0x1f   : > { %482 = vmatprep.subr.bf16.mxu0 %v549_v0  ;;  %251 = vxpose.xlu0.c.b16.cont [4/7] (short) (narrow) %v223_v18, 16 }
  0x22   : > { %483 = vmatpush3.bf16.msra.mxu0 %v523_v21 }
  0x23   : > { %484 = vmatprep.subr.bf16.mxu0 %v549_v0  ;;  %252 = vxpose.xlu0.c.b16.cont [5/7] (short) (narrow) %v224_v22, 16 }
  0x26   : > { %485 = vmatpush3.bf16.msra.mxu0 %v524_v25 }
  0x27   : > { %253 = vxpose.xlu0.c.b16.cont [6/7] (short) (narrow) %v225_v26, 16 }
  0x2b   : > { %254 = vxpose.xlu0.c.b16.end [7/7] (short) (narrow) %v226_v29, 16 }
  0x75   : > { %v256_v30 = vpop.trf.xlu0 }
  0x76   : > { %487 = vmatmul.mubr.msk.bf16.vlgmr.msra.gmra.mxu0 %vm305_vm2, %v256_v30 }
 0x136   : > { %v347_v32 = vpop.f32.mrf.mxu0 }
 0x137   : > { %v348_v33 = vadd.f32 %v452_v31, %v347_v32 }
 0x138   : > { %v488_v34 = vpop.f32.mrf.mxu0 }
 0x139   : > { %355 = vst.msk [vmem:[%s203_s16] sm:$0xff] %vm354_vm3, %v348_v33 }
 0x13a   : > { %v350_v35 = vpop.f32.mrf.mxu0 }
 0x13b   : > { %v351_v36 = vadd.f32 %v452_v31, %v350_v35 }
 0x13c   : > { %v489_v37 = vpop.f32.mrf.mxu0 }
 0x13d   : > { %356 = vst.msk [vmem:[%s203_s16 + $0x8] sm:$0xff] %vm354_vm3, %v351_v36 }
 0x13e PF: > { %s13_s14 = sadd.s32 1, %s547_s14   ;;  %s652_s12 = smov %s543_s13 }
 0x13f   : > { %p10_p5 = scmp.ge.s32.totalorder %s13_s14, 4   ;;  %s653_s13 = smov %s655_s15 }
 0x141   :  { %12 = sbr.rel (!%p10_p5) target bundleno = 2 (0x2), region = 62 }

// kernel: classify.7
= control target key start
LH: loop header
LB: loop body
LE: loop exit
PB: predicated region body
PF: predicated region fallthrough
CT: control target
= control target key end

     0   :  { %s513_s18 = smov 0   ;;  %s563_s0 = inlined_call_operand.vmem [shape: f32[32,64], index: 0, kind: input, shape index: {}]   ;;  %s564_s1 = inlined_call_operand.vmem [shape: f32[1,64], index: 1, kind: input, shape index: {}]   ;;  %s565_s2 = inlined_call_operand.vmem [shape: f32[1,64], index: 2, kind: input, shape index: {}]   ;;  %s566_s3 = inlined_call_operand.vmem [shape: bf16[64,128], index: 3, kind: input, shape index: {}]   ;;  %s567_s4 = inlined_call_operand.vmem [shape: f32[1,128], index: 4, kind: input, shape index: {}]   ;;  %s568_s5 = inlined_call_operand.vmem [shape: f32[32,128], index: 5, kind: output, shape index: {}]  }
   0x1 LB: > { %s419_s19 = sadd.s32 4294967295, %s479_s18   ;;  %p423_p0 = scmp.ge.s32.totalorder %s479_s18, 1  ;;  %s479_s18 = sphi %s513_s18, %s15_s18  }
   0x2   : > { %p188_p1 = scmp.lt.s32.totalorder %s479_s18, 3 }
   0x4   : > { %p189_p2 = pnand %p423_p0, %p188_p1 }
   0x5   : > { %s424_s20 = sshll.u32 (!%p189_p2), %s419_s19, 1 }
   0x6   : > { %192 = sbr.rel (%p189_p2) target bundleno = 529 (0x211), region = 40  ;;  %p217_p3 = scmp.lt.s32.totalorder (!%p189_p2), %s424_s20, 3 }
   0xb   : > { %s570_s20 = smov (!%p217_p3, %s424_s20), 3  ;;  %vm233_vm0 = vcmask 523264   ;;  %v465_v14 = vld [vmem:[%s566_s3 + $0x18] sm:$0xff]   ;;  %v481_v15 = vmov 0.0   ;;  %vm482_vm1 = vmmov 0   ;;  %v466_v16 = vld [vmem:[%s566_s3 + $0x10] sm:$0xff]  }
   0xc   : > { %s425_s21 = sshll.u32 %s570_s20, 3  ;;  %443 = vmatprep.subr.bf16.mxu0 %v481_v15  ;;  %451 = vmatprep.mubr.msk.bf16.mxu0 %vm482_vm1, %v481_v15  ;;  %v467_v17 = vld [vmem:[%s566_s3 + $0x8] sm:$0xff]   ;;  %v468_v18 = vld [vmem:[%s566_s3] sm:$0xff]  }
   0xd   : > { %s220_s24 = scalar_lea.vmem %s563_s0, %s425_s21  ;;  %444 = vmatpush3.bf16.msra.mxu0 %v465_v14  ;;  %v428_v27 = vld [vmem:[%s564_s1] ss:$0 sm:$0xff]  ;;  %s226_s16 = scalar_lea.vmem %s568_s5, %s425_s21 }
   0xe   : > { %v229_v0 = vld [vmem:[%s220_s24] sm:$0xff]  ;;  %v230_v1 = vld [vmem:[%s220_s24 + $0x8] sm:$0xff]  ;;  %445 = vmatprep.subr.bf16.mxu0 %v481_v15 }
   0xf   : > { %v234_v2 = vsel %vm233_vm0, %v229_v0, 0.0  ;;  %v237_v3 = vsel %vm233_vm0, %v230_v1, 0.0  ;;  %v429_v31 = vld [vmem:[%s565_s2] ss:$0 sm:$0xff] }
  0x10   : > { %235 = vadd.xlane.f32.xlu0 %v234_v2  ;;  %v430_v36 = vld [vmem:[%s567_s4] ss:$0 sm:$0xff] }
  0x11   : > { %446 = vmatpush3.bf16.msra.mxu0 %v466_v16 }
  0x12   : > { %447 = vmatprep.subr.bf16.mxu0 %v481_v15 }
  0x14   : > { %238 = vadd.xlane.f32.xlu0 %v237_v3 }
  0x15   : > { %448 = vmatpush3.bf16.msra.mxu0 %v467_v17 }
  0x16   : > { %449 = vmatprep.subr.bf16.mxu0 %v481_v15 }
  0x19   : > { %450 = vmatpush3.bf16.msra.mxu0 %v468_v18 }
  0x99   : > { %v236_v4 = vpop.xlane.xlu0 %235 }
  0x9a   : > { %v241_v5 = vmul.f32 0.015625, %v236_v4 }
  0x9c   : > { %v243_v6 = vsub.f32 %v229_v0, %v241_v5 }
  0x9d   : > { %v239_v7 = vpop.xlane.xlu0 %238 }
  0x9e   : > { %v242_v8 = vmul.f32 0.015625, %v239_v7  ;;  %v245_v9 = vmul.f32 %v243_v6, %v243_v6 }
  0xa0   : > { %v244_v10 = vsub.f32 %v230_v1, %v242_v8  ;;  %v247_v11 = vsel %vm233_vm0, %v245_v9, 0.0 }
  0xa1   : > { %248 = vadd.xlane.f32.xlu1 %v247_v11 }
  0xa2   : > { %v246_v12 = vmul.f32 %v244_v10, %v244_v10 }
  0xa4   : > { %v250_v13 = vsel %vm233_vm0, %v246_v12, 0.0 }
  0xa5   : > { %251 = vadd.xlane.f32.xlu1 %v250_v13 }
 0x12a   : > { %v249_v19 = vpop.xlane.xlu1 %248 }
 0x12b   : > { %v253_v20 = vmul.f32 0.015625, %v249_v19 }
 0x12d   : > { %v255_v21 = vadd.f32 1e-05, %v253_v20 }
 0x12e   : > { %v252_v22 = vpop.xlane.xlu1 %251 }
 0x12f   : > { %469 = vrsqrt.f32 %v255_v21  ;;  %v254_v23 = vmul.f32 0.015625, %v252_v22 }
 0x131   : > { %v256_v24 = vadd.f32 1e-05, %v254_v23 }
 0x133   : > { %471 = vrsqrt.f32 %v256_v24 }
 0x13c   : > { %v470_v25 = vpop.eup %469 }
 0x13d   : > { %v259_v26 = vmul.f32 %v470_v25, %v243_v6 }
 0x13f   : > { %v267_v30 = vmul.f32 %v428_v27, %v259_v26 }
 0x140   : > { %v472_v28 = vpop.eup %471 }
 0x141   : > { %v260_v29 = vmul.f32 %v472_v28, %v244_v10  ;;  %v275_v33 = vadd.f32 %v429_v31, %v267_v30 }
 0x143   : > { %v268_v32 = vmul.f32 %v428_v27, %v260_v29 }
 0x145   : > { %v276_v34 = vadd.f32 %v429_v31, %v268_v32 }
 0x147   : > { %v277_v35 = vpack.c.bf16 %v276_v34, %v275_v33 }
 0x149   : > { %452 = vmatmul.mubr.msk.bf16.vlgmr.msra.gmra.mxu0 %vm233_vm0, %v277_v35 }
 0x209   : > { %v354_v37 = vpop.f32.mrf.mxu0 }
 0x20a   : > { %v355_v38 = vadd.f32 %v430_v36, %v354_v37 }
 0x20b   : > { %v453_v39 = vpop.f32.mrf.mxu0 }
 0x20c   : > { %361 = vst [vmem:[%s226_s16] sm:$0xff] %v355_v38 }
 0x20d   : > { %v357_v40 = vpop.f32.mrf.mxu0 }
 0x20e   : > { %v358_v41 = vadd.f32 %v430_v36, %v357_v40 }
 0x20f   : > { %v454_v42 = vpop.f32.mrf.mxu0 }
 0x210   : > { %362 = vst [vmem:[%s226_s16 + $0x8] sm:$0xff] %v358_v41 }
 0x211 PF: > { %s15_s18 = sadd.s32 1, %s479_s18  }
 0x212   : > { %p12_p4 = scmp.ge.s32.totalorder %s15_s18, 4  }
 0x214   :  { %14 = sbr.rel (!%p12_p4) target bundleno = 1 (0x1), region = 70 }

// kernel: classify.5
= control target key start
LH: loop header
LB: loop body
LE: loop exit
PB: predicated region body
PF: predicated region fallthrough
CT: control target
= control target key end

     0   :  { %s2328_s21 = smov 0   ;;  %s2689_s0 = inlined_call_operand.vmem [shape: f32[2,17,64], index: 0, kind: input, shape index: {}]   ;;  %s2690_s1 = inlined_call_operand.vmem [shape: f32[1,64], index: 1, kind: input, shape index: {}, may-alias: {1,6}]   ;;  %s2691_s2 = inlined_call_operand.vmem [shape: f32[1,64], index: 2, kind: input, shape index: {}, may-alias: {2,5,7,11}]   ;;  %s2692_s3 = inlined_call_operand.vmem [shape: bf16[64,192], index: 3, kind: input, shape index: {}]   ;;  %s2693_s4 = inlined_call_operand.vmem [shape: bf16[64,64], index: 4, kind: input, shape index: {}]   ;;  %s2694_s5 = inlined_call_operand.vmem [shape: f32[1,64], index: 5, kind: input, shape index: {}, may-alias: {2,5,7,11}]   ;;  %s2695_s6 = inlined_call_operand.vmem [shape: f32[1,64], index: 6, kind: input, shape index: {}, may-alias: {1,6}]   ;;  %s2696_s7 = inlined_call_operand.vmem [shape: f32[1,64], index: 7, kind: input, shape index: {}, may-alias: {2,5,7,11}]   ;;  %s2697_s8 = inlined_call_operand.vmem [shape: bf16[64,256], index: 8, kind: input, shape index: {}]   ;;  %s2698_s9 = inlined_call_operand.vmem [shape: f32[1,256], index: 9, kind: input, shape index: {}]   ;;  %s2699_s10 = inlined_call_operand.vmem [shape: bf16[256,64], index: 10, kind: input, shape index: {}]   ;;  %s2700_s11 = inlined_call_operand.vmem [shape: f32[1,64], index: 11, kind: input, shape index: {}, may-alias: {2,5,7,11}]   ;;  %s2701_s12 = inlined_call_operand.vmem [shape: f32[2,17,64], index: 12, kind: output, shape index: {}]  }
   0x1 LB: > { %s1891_s22 = sadd.s32 4294967295, %s2253_s21   ;;  %p1895_p0 = scmp.ge.s32.totalorder %s2253_s21, 1  ;;  %s2253_s21 = sphi %s2328_s21, %s22_s21  }
   0x2   : > { %p362_p1 = scmp.lt.s32.totalorder %s2253_s21, 3 }
   0x4   : > { %p363_p2 = pnand %p1895_p0, %p362_p1 }
   0x5   : > { %p404_p3 = scmp.lt.s32.totalorder (!%p363_p2), %s1891_s22, 1  ;;  %s2256_s14 = smov (!%p363_p2), 48  }
   0x6   : > { %366 = sbr.rel (%p363_p2) target bundleno = 3060 (0xbf4), region = 68  ;;  %s2257_s15 = smov (!%p363_p2), 64  }
   0x7   : > { %s2258_s16 = smov (!%p363_p2), 112   ;;  %s2259_s17 = smov (!%p363_p2), 32  }
   0x8   : > { %s2260_s18 = smov (!%p363_p2), 96   ;;  %s2261_s19 = smov (!%p363_p2), 16  }
   0x9   : > { %s2262_s20 = smov (!%p363_p2), 80  }
   0xb   : > { %s2703_s22 = smov (!%p404_p3, %s1891_s22), 1  ;;  %vm420_vm0 = vcmask 523264   ;;  %vm427_vm1 = vcmask 516096   ;;  %v2131_v21 = vld [vmem:[%s2692_s3 + $0x34] ss:$8 sps:$4 sm:$0xff]   ;;  %v2255_v25 = vmov 0  }
   0xc   : > { %s2114_s23 = smul.u32 24, %s2703_s22  ;;  %v2133_v22 = vld [vmem:[%s2692_s3 + $0x30] ss:$8 sps:$4 sm:$0xff]   ;;  %v2134_v23 = vld [vmem:[%s2692_s3 + $0x24] ss:$8 sps:$4 sm:$0xff]   ;;  %544 = vmatprep.subr.bf16.mxu1 %v2131_v21  ;;  %568 = vmatprep.mubr.bf16.mxu1 %v2255_v25  ;;  %vm597_vm2 = vcmask 130048  }
   0xd   : > { %545 = vmatpush1.bf16.msra.mxu1 %v2133_v22  ;;  %v2136_v24 = vld [vmem:[%s2692_s3 + $0x20] ss:$8 sps:$4 sm:$0xff]   ;;  %v2137_v26 = vld [vmem:[%s2692_s3 + $0x14] ss:$8 sps:$4 sm:$0xff]   ;;  %v2139_v27 = vld [vmem:[%s2692_s3 + $0x10] ss:$8 sps:$4 sm:$0xff]  }
   0xe   : > { %s408_s26 = scalar_lea.vmem %s2689_s0, %s2114_s23  ;;  %546 = vmatprep.subr.bf16.mxu1 %v2134_v23  ;;  %v2140_v28 = vld [vmem:[%s2692_s3 + $0x4] ss:$8 sps:$4 sm:$0xff]   ;;  %v2142_v29 = vld [vmem:[%s2692_s3] ss:$8 sps:$4 sm:$0xff]   ;;  %vm701_vm3 = vcmask 1040384   ;;  %vm658_vm4 = vcmask 138240  }
   0xf   : > { %v2344_v0 = vld [vmem:[%s408_s26] sm:$0xff]  ;;  %v2346_v1 = vld [vmem:[%s408_s26 + $0x10] sm:$0x1]  ;;  %v2348_v2 = vld [vmem:[%s408_s26 + $0x8] sm:$0xff]  ;;  %vm665_vm5 = vcmask 131072   ;;  %vm757_vm6 = vcmask 122880  }
  0x10   : > { %v421_v3 = vsel %vm420_vm0, %v2344_v0, 0.0  ;;  %v428_v4 = vsel %vm427_vm1, %v2346_v1, 0.0  ;;  %v424_v5 = vsel %vm420_vm0, %v2348_v2, 0.0  ;;  %v1898_v41 = vld [vmem:[%s2690_s1] ss:$0 sm:$0xff]  ;;  %vm938_vm7 = vcmask 261248  }
  0x11   : > { %422 = vadd.xlane.f32.xlu0 %v421_v3  ;;  %429 = vadd.xlane.f32.xlu1 %v428_v4  ;;  %v1899_v46 = vld [vmem:[%s2691_s2] ss:$0 sm:$0xff]  ;;  %vm941_vm8 = vcmask 254080   ;;  %vm1120_vm9 = vcmask 392448   ;;  %vm1123_vm10 = vcmask 385280   ;;  %vm1302_vm11 = vcmask 523648  }
  0x12   : > { %547 = vmatpush1.bf16.msra.mxu1 %v2136_v24  ;;  %vm1305_vm12 = vcmask 516480  }
  0x13   : > { %548 = vmatprep.subr.bf16.mxu1 %v2137_v26 }
  0x15   : > { %425 = vadd.xlane.f32.xlu0 %v424_v5 }
  0x16   : > { %549 = vmatpush1.bf16.msra.mxu1 %v2139_v27 }
  0x17   : > { %550 = vmatprep.subr.bf16.mxu1 %v2140_v28 }
  0x1a   : > { %551 = vmatpush1.bf16.msra.mxu1 %v2142_v29 }
  0x9a   : > { %v423_v6 = vpop.xlane.xlu0 %422  ;;  %v430_v7 = vpop.xlane.xlu1 %429 }
  0x9b   : > { %v432_v8 = vmul.f32 0.015625, %v423_v6  ;;  %v434_v9 = vmul.f32 0.015625, %v430_v7 }
  0x9d   : > { %v435_v10 = vsub.f32 %v2344_v0, %v432_v8  ;;  %v437_v11 = vsub.f32 %v2346_v1, %v434_v9 }
  0x9e   : > { %v426_v12 = vpop.xlane.xlu0 %425 }
  0x9f   : > { %v433_v13 = vmul.f32 0.015625, %v426_v12  ;;  %v438_v14 = vmul.f32 %v435_v10, %v435_v10  ;;  %v440_v15 = vmul.f32 %v437_v11, %v437_v11  ;;  %v2431_v12 = vsel %vm701_vm3, 65535, %v2255_v25 }
  0xa1   : > { %v436_v16 = vsub.f32 %v2348_v2, %v433_v13  ;;  %v441_v17 = vsel %vm420_vm0, %v438_v14, 0.0  ;;  %v447_v18 = vsel %vm427_vm1, %v440_v15, 0.0 }
  0xa2   : > { %442 = vadd.xlane.f32.xlu1 %v441_v17 }
  0xa3   : > { %v439_v19 = vmul.f32 %v436_v16, %v436_v16 }
  0xa5   : > { %v444_v20 = vsel %vm420_vm0, %v439_v19, 0.0 }
  0xa6   : > { %448 = vadd.xlane.f32.xlu1 %v447_v18  ;;  %445 = vadd.xlane.f32.xlu0 %v444_v20 }
 0x12b   : > { %v443_v30 = vpop.xlane.xlu1 %442 }
 0x12c   : > { %v450_v31 = vmul.f32 0.015625, %v443_v30 }
 0x12e   : > { %v453_v32 = vadd.f32 1e-05, %v450_v31 }
 0x12f   : > { %v449_v33 = vpop.xlane.xlu1 %448  ;;  %v446_v34 = vpop.xlane.xlu0 %445 }
 0x130   : > { %2175 = vrsqrt.f32 %v453_v32  ;;  %v452_v35 = vmul.f32 0.015625, %v449_v33  ;;  %v451_v36 = vmul.f32 0.015625, %v446_v34 }
 0x132   : > { %v455_v37 = vadd.f32 1e-05, %v452_v35  ;;  %v454_v38 = vadd.f32 1e-05, %v451_v36 }
 0x134   : > { %2177 = vrsqrt.f32 %v455_v37 }
 0x135   : > { %2179 = vrsqrt.f32 %v454_v38 }
 0x13d   : > { %v2176_v39 = vpop.eup %2175 }
 0x13e   : > { %v459_v40 = vmul.f32 %v2176_v39, %v435_v10 }
 0x140   : > { %v468_v45 = vmul.f32 %v1898_v41, %v459_v40 }
 0x141   : > { %v2178_v42 = vpop.eup %2177 }
 0x142   : > { %v2180_v43 = vpop.eup %2179  ;;  %v461_v48 = vmul.f32 %v2178_v42, %v437_v11  ;;  %v477_v49 = vadd.f32 %v1899_v46, %v468_v45 }
 0x143   : > { %v460_v44 = vmul.f32 %v2180_v43, %v436_v16 }
 0x144   : > { %v470_v52 = vmul.f32 %v1898_v41, %v461_v48 }
 0x145   : > { %v469_v47 = vmul.f32 %v1898_v41, %v460_v44 }
 0x146   : > { %v479_v53 = vadd.f32 %v1899_v46, %v470_v52 }
 0x147   : > { %v478_v50 = vadd.f32 %v1899_v46, %v469_v47 }
 0x148   : > { %v481_v54 = vpack.c.bf16 %v479_v53, %v479_v53 }
 0x149   : > { %v480_v51 = vpack.c.bf16 %v478_v50, %v477_v49 }
 0x14b   : > { %1908 = vmatmul.mubr.msk.bf16.vlgmr.msra.gmra.mxu1 %vm420_vm0, %v480_v51 }
 0x14c   : > { %578 = vmatprep.mubr.bf16.mxu1 %v2255_v25 }
 0x153   : > { %1909 = vmatmul.mubr.msk.bf16.gmra.mxu1 %vm420_vm0, %v481_v54 }
 0x20b   : > { %v570_v55 = vpop.f32.mrf.mxu1 }
 0x20d   : > { %v572_v56 = vpop.f32.mrf.mxu1 }
 0x20f   : > { %v574_v57 = vpop.f32.mrf.mxu1 }
 0x210   : > { %v2396_v58 = vpack.c.bf16 %v574_v57, %v570_v55 }
 0x211   : > { %v576_v59 = vpop.f32.mrf.mxu1 }
 0x212   : > { %v2398_v60 = vpack.c.bf16 %v576_v59, %v572_v56  ;;  %2034 = vmatprep.mubr.msk.bf16.mxu1 %vm597_vm2, %v2396_v58 }
 0x213   : > { %v580_v61 = vpop.f32.mrf.mxu1 }
 0x214   : > { %v2402_v62 = vpack.c.bf16 %v580_v61, %v580_v61 }
 0x215   : > { %v582_v63 = vpop.f32.mrf.mxu1 }
 0x216   : > { %765 = vrot.lane.b32.xlu1 %v2402_v62, %s2256_s14  ;;  %595 = vrot.lane.b32.xlu0 %v2402_v62, %s2257_s15  ;;  %v2426_v11 = vpack.c.bf16 %v582_v63, %v582_v63 }
 0x217   : > { %v584_v3 = vpop.f32.mrf.mxu1 }
 0x218   : > { %v705_v16 = vand.u32 %v2431_v12, %v2426_v11 }
 0x219   : > { %v585_v4 = vpop.f32.mrf.mxu1 }
 0x21a   : > { %593 = vrot.lane.b32.xlu1 %v2396_v58, %s2257_s15  ;;  %759 = vrot.lane.b32.xlu0 %v2396_v58, %s2258_s16 }
 0x21e   : > { %763 = vrot.lane.b32.xlu1 %v2396_v58, %s2256_s14  ;;  %761 = vrot.lane.b32.xlu0 %v2402_v62, %s2258_s16 }
 0x222   : > { %949 = vrot.lane.b32.xlu1 %v2402_v62, %s2259_s17  ;;  %943 = vrot.lane.b32.xlu0 %v2396_v58, %s2260_s18 }
 0x226   : > { %947 = vrot.lane.b32.xlu1 %v2396_v58, %s2259_s17 }
 0x22a   : > { %945 = vrot.lane.b32.xlu1 %v2402_v62, %s2260_s18 }
 0x288   : > { %v766_v5 = vpop.permute.xlu1 %765  ;;  %v596_v6 = vpop.permute.xlu0 %595 }
 0x289   : > { %v608_v7 = vsel %vm597_vm2, %v596_v6, 0  ;;  %2106 = vmatprep.subr.msk.bf16.mxu1 %vm597_vm2, %v596_v6  ;;  %2108 = vmatprep.subr.msk.bf16.mxu0 %vm597_vm2, %v766_v5  ;;  %v777_v8 = vsel %vm597_vm2, %v766_v5, 0 }
 0x28a   : > { %2031 = vmatpush3.bf16.xpose.msra.mxu1 %v608_v7  ;;  %2047 = vmatpush3.bf16.xpose.msra.mxu0 %v777_v8 }
 0x28c   : > { %v594_v9 = vpop.permute.xlu1 %593  ;;  %v760_v10 = vpop.permute.xlu0 %759 }
 0x28d   : > { %2107 = vmatprep.subr.msk.bf16.mxu1 %vm597_vm2, %v594_v9  ;;  %2050 = vmatprep.mubr.msk.bf16.mxu0 %vm597_vm2, %v760_v10  ;;  %v605_v14 = vsel %vm597_vm2, %v594_v9, 0 }
 0x290   : > { %v764_v13 = vpop.permute.xlu1 %763  ;;  %v762_v17 = vpop.permute.xlu0 %761 }
 0x291   : > { %2109 = vmatprep.subr.msk.bf16.mxu0 %vm597_vm2, %v764_v13  ;;  %v774_v15 = vsel %vm597_vm2, %v764_v13, 0 }
 0x292   : > { %2033 = vmatpush3.bf16.xpose.msra.mxu1 %v605_v14  ;;  %2049 = vmatpush3.bf16.xpose.msra.mxu0 %v774_v15 }
 0x293   : > { %2038 = vmatprep.subr.bf16.mxu1 %v705_v16 }
 0x294   : > { %v950_v18 = vpop.permute.xlu1 %949  ;;  %v944_v20 = vpop.permute.xlu0 %943 }
 0x295   : > { %2110 = vmatprep.subr.msk.bf16.mxu0 %vm597_vm2, %v950_v18  ;;  %v961_v19 = vsel %vm597_vm2, %v950_v18, 0 }
 0x298   : > { %v948_v21 = vpop.permute.xlu1 %947 }
 0x299   : > { %2035 = vmatmul.mubr.msk.bf16.vlgmr.msra.gmra.mxu1 %vm597_vm2, %v2402_v62  ;;  %2051 = vmatmul.mubr.msk.bf16.vlgmr.msra.gmra.mxu0 %vm597_vm2, %v762_v17  ;;  %v958_v22 = vsel %vm597_vm2, %v948_v21, 0 }
 0x29a   : > { %2039 = vmatpush3.bf16.msra.mxu1 %v705_v16  ;;  %2063 = vmatpush3.bf16.xpose.msra.mxu0 %v961_v19 }
 0x29b   : > { %2066 = vmatprep.mubr.msk.bf16.mxu0 %vm597_vm2, %v944_v20  ;;  %2040 = vmatprep.subr.bf16.mxu1 %v2398_v60 }
 0x29c   : > { %2111 = vmatprep.subr.msk.bf16.mxu0 %vm597_vm2, %v948_v21  ;;  %v946_v23 = vpop.permute.xlu1 %945 }
 0x29e   : > { %2041 = vmatpush3.bf16.msra.mxu1 %v2398_v60 }
 0x2a2   : > { %2065 = vmatpush3.bf16.xpose.msra.mxu0 %v958_v22 }
 0x2a9   : > { %2067 = vmatmul.mubr.msk.bf16.vlgmr.msra.gmra.mxu0 %vm597_vm2, %v946_v23 }
 0x359   : > { %v2036_v24 = vpop.f32.mrf.mxu1  ;;  %v2052_v26 = vpop.f32.mrf.mxu0 }
 0x35a   : > { %v666_v33 = vsel %vm665_vm5, %v2036_v24, -inf  ;;  %v833_v36 = vsel %vm665_vm5, %v2052_v26, -inf }
 0x35b   : > { %v644_v27 = vpop.f32.mrf.mxu1  ;;  %v813_v28 = vpop.f32.mrf.mxu0 }
 0x35c   : > { %v659_v29 = vsel %vm658_vm4, %v644_v27, -inf  ;;  %v827_v35 = vsel %vm658_vm4, %v813_v28, -inf }
 0x35d   : > { %v2053_v30 = vpop.f32.mrf.mxu0  ;;  %660 = vmax.xlane.f32.xlu0 %v659_v29  ;;  %v2037_v31 = vpop.f32.mrf.mxu1 }
 0x35f   : > { %v647_v32 = vpop.f32.mrf.mxu1  ;;  %v816_v37 = vpop.f32.mrf.mxu0 }
 0x360   : > { %v662_v34 = vsel %vm658_vm4, %v647_v32, -inf  ;;  %v830_v38 = vsel %vm658_vm4, %v816_v37, -inf }
 0x361   : > { %667 = vmax.xlane.f32.xlu0 %v666_v33  ;;  %663 = vmax.xlane.f32.xlu1 %v662_v34 }
 0x365   : > { %828 = vmax.xlane.f32.xlu0 %v827_v35  ;;  %834 = vmax.xlane.f32.xlu1 %v833_v36 }
 0x369   : > { %v2068_v39 = vpop.f32.mrf.mxu0  ;;  %831 = vmax.xlane.f32.xlu0 %v830_v38 }
 0x36a   : > { %v1017_v44 = vsel %vm665_vm5, %v2068_v39, -inf }
 0x36b   : > { %v997_v40 = vpop.f32.mrf.mxu0 }
 0x36c   : > { %v1011_v41 = vsel %vm658_vm4, %v997_v40, -inf }
 0x36d   : > { %v2069_v42 = vpop.f32.mrf.mxu0  ;;  %1012 = vmax.xlane.f32.xlu0 %v1011_v41 }
 0x36f   : > { %v1000_v43 = vpop.f32.mrf.mxu0 }
 0x370   : > { %v1014_v45 = vsel %vm658_vm4, %v1000_v43, -inf }
 0x371   : > { %1018 = vmax.xlane.f32.xlu0 %v1017_v44  ;;  %1015 = vmax.xlane.f32.xlu1 %v1014_v45 }
 0x3e6   : > { %v661_v46 = vpop.xlane.xlu0 %660 }
 0x3e7   : > { %v669_v47 = vsub.f32 %v644_v27, %v661_v46 }
 0x3e9   : > { %v672_v51 = vmul.f32 1.442695, %v669_v47 }
 0x3ea   : > { %v668_v48 = vpop.xlane.xlu0 %667  ;;  %v664_v49 = vpop.xlane.xlu1 %663 }
 0x3eb   : > { %v671_v50 = vsub.f32 %v2036_v24, %v668_v48  ;;  %v670_v59 = vsub.f32 %v647_v32, %v664_v49 }
 0x3ed   : > { %v676_v52 = vmul.f32 1.442695, %v671_v50  ;;  %v674_v63 = vmul.f32 1.442695, %v670_v59 }
 0x3ee   : > { %v829_v53 = vpop.xlane.xlu0 %828  ;;  %v835_v54 = vpop.xlane.xlu1 %834 }
 0x3ef   : > { %2181 = vpow2.f32 %v676_v52  ;;  %v836_v55 = vsub.f32 %v813_v28, %v829_v53  ;;  %v838_v56 = vsub.f32 %v2052_v26, %v835_v54 }
 0x3f0   : > { %2183 = vpow2.f32 %v672_v51 }
 0x3f1   : > { %v843_v57 = vmul.f32 1.442695, %v838_v56  ;;  %v839_v61 = vmul.f32 1.442695, %v836_v55 }
 0x3f2   : > { %v832_v15 = vpop.xlane.xlu0 %831 }
 0x3f3   : > { %2185 = vpow2.f32 %v843_v57  ;;  %v837_v17 = vsub.f32 %v816_v37, %v832_v15 }
 0x3f4   : > { %2187 = vpow2.f32 %v839_v61 }
 0x3f5   : > { %2189 = vpow2.f32 %v674_v63  ;;  %v841_v20 = vmul.f32 1.442695, %v837_v17 }
 0x3f6   : > { %v1013_v16 = vpop.xlane.xlu0 %1012 }
 0x3f7   : > { %2191 = vpow2.f32 %v841_v20  ;;  %v1020_v23 = vsub.f32 %v997_v40, %v1013_v16 }
 0x3f9   : > { %v1023_v27 = vmul.f32 1.442695, %v1020_v23 }
 0x3fa   : > { %v1019_v18 = vpop.xlane.xlu0 %1018  ;;  %v1016_v19 = vpop.xlane.xlu1 %1015 }
 0x3fb   : > { %v1022_v21 = vsub.f32 %v2068_v39, %v1019_v18  ;;  %v1021_v22 = vsub.f32 %v1000_v43, %v1016_v19 }
 0x3fc   : > { %v2458_v3 = vpop.eup %2181 }
 0x3fd   : > { %v684_v4 = vsel %vm665_vm5, %v2458_v3, 0.0  ;;  %v2462_v5 = vpop.eup %2183  ;;  %v1027_v24 = vmul.f32 1.442695, %v1022_v21  ;;  %v1025_v26 = vmul.f32 1.442695, %v1021_v22 }
 0x3fe   : > { %685 = vadd.xlane.f32.xlu1 %v684_v4  ;;  %v678_v7 = vsel %vm658_vm4, %v2462_v5, 0.0 }
 0x3ff   : > { %2193 = vpow2.f32 %v1027_v24 }
 0x400   : > { %v2464_v6 = vpop.eup %2185  ;;  %2195 = vpow2.f32 %v1025_v26 }
 0x401   : > { %v851_v8 = vsel %vm665_vm5, %v2464_v6, 0.0  ;;  %v2470_v9 = vpop.eup %2187  ;;  %2197 = vpow2.f32 %v1023_v27 }
 0x402   : > { %679 = vadd.xlane.f32.xlu1 %v678_v7  ;;  %852 = vadd.xlane.f32.xlu0 %v851_v8  ;;  %v845_v10 = vsel %vm658_vm4, %v2470_v9, 0.0  ;;  %v2190_v13 = vpop.eup %2189 }
 0x403   : > { %v681_v14 = vsel %vm658_vm4, %v2190_v13, 0.0 }
 0x404   : > { %v2192_v28 = vpop.eup %2191 }
 0x405   : > { %v848_v29 = vsel %vm658_vm4, %v2192_v28, 0.0 }
 0x406   : > { %846 = vadd.xlane.f32.xlu0 %v845_v10 }
 0x40a   : > { %682 = vadd.xlane.f32.xlu0 %v681_v14 }
 0x40c   : > { %v2482_v30 = vpop.eup %2193 }
 0x40d   : > { %v2484_v31 = vpop.eup %2195  ;;  %v1035_v32 = vsel %vm665_vm5, %v2482_v30, 0.0 }
 0x40e   : > { %v2488_v33 = vpop.eup %2197  ;;  %v1032_v34 = vsel %vm658_vm4, %v2484_v31, 0.0 }
 0x40f   : > { %v1029_v35 = vsel %vm658_vm4, %v2488_v33, 0.0 }
 0x413   : > { %864 = vrot.lane.b32.xlu1 %v2398_v60, %s2258_s16 }
 0x417   : > { %1048 = vrot.lane.b32.xlu1 %v2426_v11, %s2260_s18 }
 0x420   : > { %866 = vrot.lane.b32.xlu0 %v2426_v11, %s2258_s16 }
 0x43b   : > { %849 = vadd.xlane.f32.xlu1 %v848_v29 }
 0x43f   : > { %1036 = vadd.xlane.f32.xlu1 %v1035_v32  ;;  %1033 = vadd.xlane.f32.xlu0 %v1032_v34 }
 0x443   : > { %1030 = vadd.xlane.f32.xlu1 %v1029_v35 }
 0x454   : > { %1046 = vrot.lane.b32.xlu1 %v2398_v60, %s2260_s18 }
 0x455   : > { %1131 = vrot.lane.b32.xlu0 %v2402_v62, %s2261_s19 }
 0x458   : > { %1129 = vrot.lane.b32.xlu1 %v2396_v58, %s2261_s19 }
 0x459   : > { %1125 = vrot.lane.b32.xlu0 %v2396_v58, %s2262_s20 }
 0x45c   : > { %1127 = vrot.lane.b32.xlu1 %v2402_v62, %s2262_s20 }
 0x487   : > { %v686_v36 = vpop.xlane.xlu1 %685 }
 0x488   : > { %2199 = vrcp.f32 %v686_v36 }
 0x48b   : > { %v853_v37 = vpop.xlane.xlu0 %852  ;;  %v680_v38 = vpop.xlane.xlu1 %679 }
 0x48c   : > { %2201 = vrcp.f32 %v680_v38 }
 0x48f   : > { %v847_v39 = vpop.xlane.xlu0 %846  ;;  %v865_v46 = vpop.permute.xlu1 %864 }
 0x493   : > { %v683_v40 = vpop.xlane.xlu0 %682  ;;  %v1049_v50 = vpop.permute.xlu1 %1048 }
 0x494   : > { %2203 = vrcp.f32 %v683_v40  ;;  %v1058_v51 = vand.u32 %v1049_v50, %v2431_v12 }
 0x495   : > { %v2200_v43 = vpop.eup %2199  ;;  %2205 = vrcp.f32 %v853_v37 }
 0x496   : > { %v692_v58 = vmul.f32 %v2200_v43, %v2458_v3  ;;  %2207 = vrcp.f32 %v847_v39 }
 0x497   : > { %v867_v41 = vpop.permute.xlu0 %866 }
 0x498   : > { %v876_v42 = vand.u32 %v867_v41, %v2431_v12  ;;  %v694_v49 = vpack.c.bf16 %v692_v58, %v692_v58 }
 0x499   : > { %v2202_v44 = vpop.eup %2201 }
 0x49a   : > { %2054 = vmatprep.subr.bf16.mxu1 %v876_v42  ;;  %v690_v62 = vmul.f32 %v2202_v44, %v2462_v5 }
 0x4a1   : > { %v2204_v45 = vpop.eup %2203 }
 0x4a2   : > { %v691_v47 = vmul.f32 %v2204_v45, %v2190_v13  ;;  %v2206_v56 = vpop.eup %2205 }
 0x4a3   : > { %v2208_v57 = vpop.eup %2207  ;;  %v859_v61 = vmul.f32 %v2206_v56, %v2464_v6 }
 0x4a4   : > { %v693_v48 = vpack.c.bf16 %v691_v47, %v690_v62  ;;  %v857_v63 = vmul.f32 %v2208_v57, %v2470_v9 }
 0x4a5   : > { %v861_v5 = vpack.c.bf16 %v859_v61, %v859_v61 }
 0x4a6   : > { %2042 = vmatprep.mubr.msk.bf16.mxu1 %vm658_vm4, %v693_v48 }
 0x4a7   : > { %2043 = vmatmul.mubr.msk.bf16.vlgmr.msra.gmra.mxu1 %vm658_vm4, %v694_v49 }
 0x4a8   : > { %2055 = vmatpush3.bf16.msra.mxu1 %v876_v42 }
 0x4a9   : > { %2056 = vmatprep.subr.bf16.mxu1 %v865_v46 }
 0x4ac   : > { %2057 = vmatpush3.bf16.msra.mxu1 %v865_v46 }
 0x4ad   : > { %2070 = vmatprep.subr.bf16.mxu1 %v1058_v51 }
 0x4c4   : > { %v850_v52 = vpop.xlane.xlu1 %849 }
 0x4c5   : > { %2209 = vrcp.f32 %v850_v52 }
 0x4c8   : > { %v1037_v53 = vpop.xlane.xlu1 %1036  ;;  %v1034_v54 = vpop.xlane.xlu0 %1033 }
 0x4c9   : > { %2211 = vrcp.f32 %v1037_v53 }
 0x4ca   : > { %2213 = vrcp.f32 %v1034_v54 }
 0x4cc   : > { %v1031_v55 = vpop.xlane.xlu1 %1030  ;;  %v1132_v14 = vpop.permute.xlu0 %1131 }
 0x4cd   : > { %2215 = vrcp.f32 %v1031_v55  ;;  %v1143_v18 = vsel %vm597_vm2, %v1132_v14, 0 }
 0x4d0   : > { %v1047_v10 = vpop.permute.xlu1 %1046  ;;  %v1126_v19 = vpop.permute.xlu0 %1125 }
 0x4d2   : > { %v2210_v59 = vpop.eup %2209 }
 0x4d3   : > { %v858_v3 = vmul.f32 %v2210_v59, %v2192_v28 }
 0x4d4   : > { %v1130_v20 = vpop.permute.xlu1 %1129 }
 0x4d5   : > { %v860_v4 = vpack.c.bf16 %v858_v3, %v857_v63  ;;  %v1140_v21 = vsel %vm597_vm2, %v1130_v20, 0 }
 0x4d6   : > { %v2212_v7 = vpop.eup %2211 }
 0x4d7   : > { %2058 = vmatprep.mubr.msk.bf16.mxu1 %vm658_vm4, %v860_v4  ;;  %v2214_v8 = vpop.eup %2213  ;;  %v1043_v15 = vmul.f32 %v2212_v7, %v2482_v30 }
 0x4d8   : > { %2059 = vmatmul.mubr.msk.bf16.vlgmr.msra.gmra.mxu1 %vm658_vm4, %v861_v5  ;;  %v1042_v9 = vmul.f32 %v2214_v8, %v2484_v31  ;;  %v1128_v22 = vpop.permute.xlu1 %1127 }
 0x4d9   : > { %2071 = vmatpush3.bf16.msra.mxu1 %v1058_v51  ;;  %v1045_v17 = vpack.c.bf16 %v1043_v15, %v1043_v15 }
 0x4da   : > { %v2216_v13 = vpop.eup %2215  ;;  %2072 = vmatprep.subr.bf16.mxu1 %v1047_v10 }
 0x4db   : > { %v1041_v6 = vmul.f32 %v2216_v13, %v2488_v33 }
 0x4dd   : > { %2073 = vmatpush3.bf16.msra.mxu1 %v1047_v10  ;;  %v1044_v16 = vpack.c.bf16 %v1042_v9, %v1041_v6 }
 0x4de   : > { %2112 = vmatprep.subr.msk.bf16.mxu1 %vm597_vm2, %v1132_v14 }
 0x4df   : > { %2074 = vmatprep.mubr.msk.bf16.mxu1 %vm658_vm4, %v1044_v16 }
 0x4e0   : > { %2075 = vmatmul.mubr.msk.bf16.vlgmr.msra.gmra.mxu1 %vm658_vm4, %v1045_v17  ;;  %v2143_v17 = vld [vmem:[%s2693_s4 + $0x18] sm:$0xff]  }
 0x4e1   : > { %2079 = vmatpush3.bf16.xpose.msra.mxu1 %v1143_v18  ;;  %2082 = vmatprep.mubr.msk.bf16.mxu1 %vm597_vm2, %v1126_v19  ;;  %v2144_v18 = vld [vmem:[%s2693_s4 + $0x10] sm:$0xff]   ;;  %v2145_v19 = vld [vmem:[%s2693_s4 + $0x8] sm:$0xff]  }
 0x4e2   : > { %2113 = vmatprep.subr.msk.bf16.mxu1 %vm597_vm2, %v1130_v20  ;;  %v2146_v20 = vld [vmem:[%s2693_s4] sm:$0xff]  }
 0x4e9   : > { %2081 = vmatpush3.bf16.xpose.msra.mxu1 %v1140_v21 }
 0x4f0   : > { %2083 = vmatmul.mubr.msk.bf16.vlgmr.msra.gmra.mxu1 %vm597_vm2, %v1128_v22 }
 0x4f1   : > { %1570 = vmatprep.mubr.bf16.mxu1 %v2255_v25 }
 0x567   : > { %v2044_v23 = vpop.f32.mrf.mxu1 }
 0x568   : > { %758 = vst.msk [vmem:[#allocation2 + $0x10] sm:$0x1] %vm757_vm6, %v2044_v23 }
 0x569   : > { %v741_v24 = vpop.f32.mrf.mxu1 }
 0x56a   : > { %755 = vst.msk [vmem:[#allocation2] sm:$0xff] %vm597_vm2, %v741_v24 }
 0x56b   : > { %v2045_v26 = vpop.f32.mrf.mxu1 }
 0x56d   : > { %v744_v27 = vpop.f32.mrf.mxu1 }
 0x56e   : > { %756 = vst.msk [vmem:[#allocation2 + $0x8] sm:$0xff] %vm597_vm2, %v744_v27 }
 0x598   : > { %v2060_v28 = vpop.f32.mrf.mxu1 }
 0x59a   : > { %v912_v29 = vpop.f32.mrf.mxu1 }
 0x59c   : > { %v2061_v30 = vpop.f32.mrf.mxu1 }
 0x59e   : > { %v915_v31 = vpop.f32.mrf.mxu1 }
 0x5a0   : > { %v2076_v32 = vpop.f32.mrf.mxu1 }
 0x5a2   : > { %v1094_v33 = vpop.f32.mrf.mxu1 }
 0x5a4   : > { %v2077_v34 = vpop.f32.mrf.mxu1 }
 0x5a6   : > { %v1097_v35 = vpop.f32.mrf.mxu1 }
 0x5b0   : > { %v2084_v36 = vpop.f32.mrf.mxu1 }
 0x5b1   : > { %v1199_v41 = vsel %vm665_vm5, %v2084_v36, -inf }
 0x5b2   : > { %v1179_v37 = vpop.f32.mrf.mxu1 }
 0x5b3   : > { %v1193_v38 = vsel %vm658_vm4, %v1179_v37, -inf }
 0x5b4   : > { %1194 = vmax.xlane.f32.xlu0 %v1193_v38  ;;  %v2085_v39 = vpop.f32.mrf.mxu1 }
 0x5b6   : > { %v1182_v40 = vpop.f32.mrf.mxu1 }
 0x5b7   : > { %v1196_v42 = vsel %vm658_vm4, %v1182_v40, -inf }
 0x5b8   : > { %1200 = vmax.xlane.f32.xlu0 %v1199_v41  ;;  %1197 = vmax.xlane.f32.xlu1 %v1196_v42 }
 0x63d   : > { %v1195_v43 = vpop.xlane.xlu0 %1194 }
 0x63e   : > { %v1202_v44 = vsub.f32 %v1179_v37, %v1195_v43  ;;  %v1932_v37 = vld [vmem:[%s2694_s5] ss:$0 sm:$0xff] }
 0x640   : > { %v1205_v45 = vmul.f32 1.442695, %v1202_v44 }
 0x641   : > { %v1201_v58 = vpop.xlane.xlu0 %1200  ;;  %v1198_v46 = vpop.xlane.xlu1 %1197 }
 0x642   : > { %2217 = vpow2.f32 %v1205_v45  ;;  %v1204_v62 = vsub.f32 %v2084_v36, %v1201_v58  ;;  %v1203_v47 = vsub.f32 %v1182_v40, %v1198_v46 }
 0x644   : > { %v1209_v48 = vmul.f32 1.442695, %v1204_v62  ;;  %v1207_v49 = vmul.f32 1.442695, %v1203_v47 }
 0x646   : > { %2219 = vpow2.f32 %v1209_v48 }
 0x647   : > { %2221 = vpow2.f32 %v1207_v49 }
 0x64f   : > { %v2218_v50 = vpop.eup %2217 }
 0x650   : > { %v1211_v51 = vsel %vm658_vm4, %v2218_v50, 0.0 }
 0x651   : > { %1212 = vadd.xlane.f32.xlu0 %v1211_v51 }
 0x653   : > { %v2220_v52 = vpop.eup %2219 }
 0x654   : > { %v2222_v53 = vpop.eup %2221  ;;  %v1217_v54 = vsel %vm665_vm5, %v2220_v52, 0.0 }
 0x655   : > { %1218 = vadd.xlane.f32.xlu1 %v1217_v54  ;;  %v1214_v55 = vsel %vm658_vm4, %v2222_v53, 0.0 }
 0x656   : > { %1215 = vadd.xlane.f32.xlu0 %v1214_v55 }
 0x666   : > { %1228 = vrot.lane.b32.xlu1 %v2398_v60, %s2262_s20 }
 0x66a   : > { %929 = vrot.lane.b32.xlu1 %v912_v29, %s2261_s19 }
 0x66c   : > { %1230 = vrot.lane.b32.xlu0 %v2426_v11, %s2262_s20 }
 0x66e   : > { %931 = vrot.lane.b32.xlu1 %v915_v31, %s2261_s19 }
 0x670   : > { %933 = vrot.lane.b32.xlu0 %v2060_v28, %s2261_s19 }
 0x672   : > { %1111 = vrot.lane.b32.xlu1 %v1094_v33, %s2259_s17 }
 0x674   : > { %1113 = vrot.lane.b32.xlu0 %v1097_v35, %s2259_s17 }
 0x676   : > { %1115 = vrot.lane.b32.xlu1 %v2076_v32, %s2259_s17 }
 0x6da   : > { %v1213_v56 = vpop.xlane.xlu0 %1212 }
 0x6db   : > { %2223 = vrcp.f32 %v1213_v56 }
 0x6de   : > { %v1219_v57 = vpop.xlane.xlu1 %1218 }
 0x6df   : > { %v1216_v59 = vpop.xlane.xlu0 %1215  ;;  %2225 = vrcp.f32 %v1219_v57 }
 0x6e0   : > { %2227 = vrcp.f32 %v1216_v59  ;;  %v2149_v59 = vld [vmem:[%s2697_s8 + $0x34] ss:$8 sps:$4 sm:$0xff]  }
 0x6e1   : > { %1546 = vmatprep.subr.bf16.mxu1 %v2149_v59 }
 0x6e2   : > { %v1229_v60 = vpop.permute.xlu1 %1228 }
 0x6e3   : > { %v1231_v61 = vpop.permute.xlu0 %1230 }
 0x6e4   : > { %v1240_v11 = vand.u32 %v1231_v61, %v2431_v12  ;;  %v2152_v61 = vld [vmem:[%s2697_s8 + $0x24] ss:$8 sps:$4 sm:$0xff]  }
 0x6e6   : > { %2086 = vmatprep.subr.bf16.mxu0 %v1240_v11  ;;  %v930_v63 = vpop.permute.xlu1 %929 }
 0x6e7   : > { %2087 = vmatpush3.bf16.msra.mxu0 %v1240_v11  ;;  %v934_v3 = vpop.permute.xlu0 %933  ;;  %939 = vst.msk [vmem:[#allocation2] sm:$0xff] %vm938_vm7, %v930_v63  ;;  %v2150_v11 = vld [vmem:[%s2697_s8 + $0x20] ss:$8 sps:$4 sm:$0xff]   ;;  %v2155_v63 = vld [vmem:[%s2697_s8 + $0x14] ss:$8 sps:$4 sm:$0xff]  }
 0x6e8   : > { %942 = vst.msk [vmem:[#allocation2 + $0x10] sm:$0x1] %vm941_vm8, %v934_v3  ;;  %2088 = vmatprep.subr.bf16.mxu0 %v1229_v60  ;;  %v2224_v5 = vpop.eup %2223  ;;  %v2153_v3 = vld [vmem:[%s2697_s8 + $0x10] ss:$8 sps:$4 sm:$0xff]  }
 0x6e9   : > { %v1223_v14 = vmul.f32 %v2224_v5, %v2218_v50  ;;  %v2156_v5 = vld [vmem:[%s2697_s8] ss:$8 sps:$4 sm:$0xff]  }
 0x6ea   : > { %v932_v4 = vpop.permute.xlu1 %931 }
 0x6eb   : > { %v1114_v7 = vpop.permute.xlu0 %1113  ;;  %2089 = vmatpush3.bf16.msra.mxu0 %v1229_v60  ;;  %940 = vst.msk [vmem:[#allocation2 + $0x8] sm:$0xff] %vm938_vm7, %v932_v4  ;;  %v2147_v60 = vld [vmem:[%s2697_s8 + $0x30] ss:$8 sps:$4 sm:$0xff]   ;;  %v2158_v4 = vld [vmem:[%s2697_s8 + $0x4] ss:$8 sps:$4 sm:$0xff]  }
 0x6ec   : > { %v2226_v8 = vpop.eup %2225  ;;  %1122 = vst.msk [vmem:[#allocation2 + $0x8] sm:$0xff] %vm1120_vm9, %v1114_v7  ;;  %2094 = vmatprep.subr.bf16.mxu0 %v2143_v17  ;;  %1547 = vmatpush1.bf16.msra.mxu1 %v2147_v60 }
 0x6ed   : > { %v2228_v10 = vpop.eup %2227  ;;  %v1225_v13 = vmul.f32 %v2226_v8, %v2220_v52  ;;  %1548 = vmatprep.subr.bf16.mxu1 %v2152_v61 }
 0x6ee   : > { %v1112_v12 = vpop.permute.xlu1 %1111  ;;  %v1224_v15 = vmul.f32 %v2228_v10, %v2222_v53 }
 0x6ef   : > { %1121 = vst.msk [vmem:[#allocation2] sm:$0xff] %vm1120_vm9, %v1112_v12  ;;  %v1227_v6 = vpack.c.bf16 %v1225_v13, %v1225_v13 }
 0x6f0   : > { %v1226_v9 = vpack.c.bf16 %v1224_v15, %v1223_v14  ;;  %1549 = vmatpush1.bf16.msra.mxu1 %v2150_v11 }
 0x6f1   : > { %1550 = vmatprep.subr.bf16.mxu1 %v2155_v63 }
 0x6f2   : > { %2090 = vmatprep.mubr.msk.bf16.mxu0 %vm658_vm4, %v1226_v9  ;;  %v1116_v16 = vpop.permute.xlu1 %1115 }
 0x6f3   : > { %2091 = vmatmul.mubr.msk.bf16.vlgmr.msra.gmra.mxu0 %vm658_vm4, %v1227_v6  ;;  %1124 = vst.msk [vmem:[#allocation2 + $0x10] sm:$0x1] %vm1123_vm10, %v1116_v16 }
 0x6f4   : > { %2095 = vmatpush3.bf16.msra.mxu0 %v2143_v17  ;;  %1551 = vmatpush1.bf16.msra.mxu1 %v2153_v3 }
 0x6f5   : > { %2096 = vmatprep.subr.bf16.mxu0 %v2144_v18  ;;  %1552 = vmatprep.subr.bf16.mxu1 %v2158_v4 }
 0x6f8   : > { %2097 = vmatpush3.bf16.msra.mxu0 %v2144_v18  ;;  %1553 = vmatpush1.bf16.msra.mxu1 %v2156_v5  ;;  %v1933_v18 = vld [vmem:[%s2695_s6] ss:$0 sm:$0xff] }
 0x6f9   : > { %2098 = vmatprep.subr.bf16.mxu0 %v2145_v19 }
 0x6fc   : > { %2099 = vmatpush3.bf16.msra.mxu0 %v2145_v19 }
 0x6fd   : > { %2100 = vmatprep.subr.bf16.mxu0 %v2146_v20 }
 0x700   : > { %2101 = vmatpush3.bf16.msra.mxu0 %v2146_v20 }
 0x7b3   : > { %v2092_v21 = vpop.f32.mrf.mxu0 }
 0x7b5   : > { %v1276_v22 = vpop.f32.mrf.mxu0 }
 0x7b6   : > { %1293 = vrot.lane.b32.xlu0 %v1276_v22, %s2256_s14  ;;  %v1934_v22 = vld [vmem:[%s2696_s7] ss:$0 sm:$0xff] }
 0x7b7   : > { %v2093_v23 = vpop.f32.mrf.mxu0 }
 0x7b9   : > { %v1279_v24 = vpop.f32.mrf.mxu0 }
 0x7ba   : > { %1297 = vrot.lane.b32.xlu0 %v2092_v21, %s2256_s14  ;;  %1295 = vrot.lane.b32.xlu1 %v1279_v24, %s2256_s14  ;;  %s413_s14 = scalar_lea.vmem %s2701_s12, %s2114_s23 }
 0x828   : > { %v1294_v26 = vpop.permute.xlu0 %1293 }
 0x829   : > { %1303 = vst.msk [vmem:[#allocation2] sm:$0xff] %vm1302_vm11, %v1294_v26 }
 0x82c   : > { %v1298_v27 = vpop.permute.xlu0 %1297  ;;  %v1296_v28 = vpop.permute.xlu1 %1295 }
 0x82d   : > { %1306 = vst.msk [vmem:[#allocation2 + $0x10] sm:$0x1] %vm1305_vm12, %v1298_v27 }
 0x82e   : > { %1304 = vst.msk [vmem:[#allocation2 + $0x8] sm:$0xff] %vm1302_vm11, %v1296_v28 }
 0x830   : > { %v1307_v29 = vld [vmem:[#allocation2] sm:$0xff] }
 0x834   : > { %v1309_v31 = vld [vmem:[#allocation2 + $0x10] sm:$0x1] }
 0x835   : > { %v1308_v30 = vld [vmem:[#allocation2 + $0x8] sm:$0xff]  ;;  %v1311_v33 = vpack.c.bf16 %v1309_v31, %v1309_v31 }
 0x836   : > { %v1310_v32 = vpack.c.bf16 %v1308_v30, %v1307_v29 }
 0x838   : > { %2102 = vmatprep.mubr.msk.bf16.mxu0 %vm420_vm0, %v1310_v32 }
 0x839   : > { %2103 = vmatmul.mubr.msk.bf16.vlgmr.msra.gmra.mxu0 %vm420_vm0, %v1311_v33  ;;  %v2159_v33 = vld [vmem:[%s2699_s10 + $0x78] sm:$0xff]  }
 0x83a   : > { %2002 = vmatprep.subr.bf16.mxu0 %v2159_v33 }
 0x8f9   : > { %v2104_v34 = vpop.f32.mrf.mxu0 }
 0x8fa   : > { %v1400_v41 = vadd.f32 %v2104_v34, %v2346_v1  ;;  %v2160_v34 = vld [vmem:[%s2699_s10 + $0x38] sm:$0xff]  }
 0x8fb   : > { %v1384_v35 = vpop.f32.mrf.mxu0  ;;  %2003 = vmatpush3.bf16.msra.mxu0 %v2160_v34 }
 0x8fc   : > { %v1398_v36 = vadd.f32 %v1384_v35, %v2344_v0  ;;  %v2576_v45 = vadd.f32 %v1932_v37, %v1400_v41  ;;  %v2161_v35 = vld [vmem:[%s2699_s10 + $0x70] sm:$0xff]   ;;  %v2167_v41 = vld [vmem:[%s2699_s10 + $0x58] sm:$0xff]  }
 0x8fd   : > { %v2105_v38 = vpop.f32.mrf.mxu0  ;;  %2004 = vmatprep.subr.bf16.mxu0 %v2161_v35 }
 0x8fe   : > { %v2568_v39 = vadd.f32 %v1932_v37, %v1398_v36  ;;  %v1419_v58 = vsel %vm427_vm1, %v2576_v45, 0.0  ;;  %v2163_v36 = vld [vmem:[%s2699_s10 + $0x68] sm:$0xff]   ;;  %v2165_v38 = vld [vmem:[%s2699_s10 + $0x60] sm:$0xff]  }
 0x8ff   : > { %v1387_v40 = vpop.f32.mrf.mxu0 }
 0x900   : > { %v1399_v42 = vadd.f32 %v1387_v40, %v2348_v2  ;;  %v1413_v43 = vsel %vm420_vm0, %v2568_v39, 0.0  ;;  %v2166_v40 = vld [vmem:[%s2699_s10 + $0x20] sm:$0xff]  }
 0x901   : > { %1414 = vadd.xlane.f32.xlu1 %v1413_v43  ;;  %v2169_v43 = vld [vmem:[%s2699_s10 + $0x50] sm:$0xff]  }
 0x902   : > { %v2574_v44 = vadd.f32 %v1932_v37, %v1399_v42  ;;  %v2164_v37 = vld [vmem:[%s2699_s10 + $0x28] sm:$0xff]   ;;  %v2168_v42 = vld [vmem:[%s2699_s10 + $0x18] sm:$0xff]  }
 0x904   : > { %v1416_v0 = vsel %vm420_vm0, %v2574_v44, 0.0 }
 0x905   : > { %1417 = vadd.xlane.f32.xlu0 %v1416_v0  ;;  %v2170_v0 = vld [vmem:[%s2699_s10 + $0x10] sm:$0xff]  }
 0x909   : > { %1420 = vadd.xlane.f32.xlu0 %v1419_v58  ;;  %v2171_v58 = vld [vmem:[%s2699_s10 + $0x48] sm:$0xff]  }
 0x98a   : > { %v1415_v46 = vpop.xlane.xlu1 %1414 }
 0x98b   : > { %v1422_v1 = vmul.f32 0.015625, %v1415_v46  ;;  %v2172_v46 = vld [vmem:[%s2699_s10 + $0x8] sm:$0xff]  }
 0x98d   : > { %v1425_v2 = vsub.f32 %v2568_v39, %v1422_v1  ;;  %v2173_v1 = vld [vmem:[%s2699_s10 + $0x40] sm:$0xff]  }
 0x98e   : > { %v1418_v62 = vpop.xlane.xlu0 %1417 }
 0x98f   : > { %v1423_v47 = vmul.f32 0.015625, %v1418_v62  ;;  %v1428_v48 = vmul.f32 %v1425_v2, %v1425_v2  ;;  %v1482_v62 = vlaneseq }
 0x991   : > { %v1426_v49 = vsub.f32 %v2574_v44, %v1423_v47  ;;  %v1431_v50 = vsel %vm420_vm0, %v1428_v48, 0.0  ;;  %v1483_v47 = vshrl.u32 %v1482_v62, 7 }
 0x992   : > { %1432 = vadd.xlane.f32.xlu0 %v1431_v50  ;;  %v1421_v51 = vpop.xlane.xlu0 %1420 }
 0x993   : > { %v1424_v52 = vmul.f32 0.015625, %v1421_v51  ;;  %v1429_v53 = vmul.f32 %v1426_v49, %v1426_v49  ;;  %v1484_v48 = vsub.s32 0, %v1483_v47  ;;  %v1488_v50 = vsub.s32 1, %v1483_v47 }
 0x995   : > { %v1427_v54 = vsub.f32 %v2576_v45, %v1424_v52  ;;  %v1434_v55 = vsel %vm420_vm0, %v1429_v53, 0.0 }
 0x996   : > { %1435 = vadd.xlane.f32.xlu1 %v1434_v55 }
 0x997   : > { %v1430_v56 = vmul.f32 %v1427_v54, %v1427_v54 }
 0x999   : > { %v1437_v57 = vsel %vm427_vm1, %v1430_v56, 0.0 }
 0x99a   : > { %1438 = vadd.xlane.f32.xlu0 %v1437_v57 }
 0xa1b   : > { %v1433_v7 = vpop.xlane.xlu0 %1432 }
 0xa1c   : > { %v1440_v8 = vmul.f32 0.015625, %v1433_v7 }
 0xa1e   : > { %v1443_v10 = vadd.f32 1e-05, %v1440_v8 }
 0xa1f   : > { %v1436_v13 = vpop.xlane.xlu1 %1435 }
 0xa20   : > { %2229 = vrsqrt.f32 %v1443_v10  ;;  %v1441_v12 = vmul.f32 0.015625, %v1436_v13 }
 0xa22   : > { %v1444_v14 = vadd.f32 1e-05, %v1441_v12 }
 0xa23   : > { %v1439_v15 = vpop.xlane.xlu0 %1438 }
 0xa24   : > { %2231 = vrsqrt.f32 %v1444_v14  ;;  %v1442_v6 = vmul.f32 0.015625, %v1439_v15 }
 0xa26   : > { %v1445_v9 = vadd.f32 1e-05, %v1442_v6 }
 0xa28   : > { %2233 = vrsqrt.f32 %v1445_v9 }
 0xa2d   : > { %v2230_v16 = vpop.eup %2229 }
 0xa2e   : > { %v1449_v17 = vmul.f32 %v2230_v16, %v1425_v2  ;;  %v2174_v2 = vld [vmem:[%s2699_s10] sm:$0xff]  }
 0xa30   : > { %v1458_v21 = vmul.f32 %v1933_v18, %v1449_v17 }
 0xa31   : > { %v2232_v19 = vpop.eup %2231 }
 0xa32   : > { %v1450_v20 = vmul.f32 %v2232_v19, %v1426_v49  ;;  %v1467_v26 = vadd.f32 %v1934_v22, %v1458_v21  ;;  %v1480_v49 = vld [vmem:[%s2698_s9] sm:$0x3] }
 0xa33   : > { %v1485_v51 = vrot.slane %v1480_v49, %v1484_v48  ;;  %v1489_v52 = vrot.slane %v1480_v49, %v1488_v50 }
 0xa34   : > { %v1459_v23 = vmul.f32 %v1933_v18, %v1450_v20 }
 0xa35   : > { %v2234_v24 = vpop.eup %2233 }
 0xa36   : > { %v1468_v27 = vadd.f32 %v1934_v22, %v1459_v23  ;;  %v1451_v28 = vmul.f32 %v2234_v24, %v1427_v54 }
 0xa38   : > { %v1470_v29 = vpack.c.bf16 %v1468_v27, %v1467_v26  ;;  %v1460_v30 = vmul.f32 %v1933_v18, %v1451_v28 }
 0xa3a   : > { %1943 = vmatmul.mubr.msk.bf16.vlgmr.msra.gmra.mxu1 %vm420_vm0, %v1470_v29  ;;  %v1469_v31 = vadd.f32 %v1934_v22, %v1460_v30 }
 0xa3b   : > { %1580 = vmatprep.mubr.bf16.mxu1 %v2255_v25  ;;  %v2162_v25 = vld [vmem:[%s2699_s10 + $0x30] sm:$0xff]  }
 0xa3c   : > { %v1471_v32 = vpack.c.bf16 %v1469_v31, %v1469_v31  ;;  %2005 = vmatpush3.bf16.msra.mxu0 %v2162_v25 }
 0xa3d   : > { %2006 = vmatprep.subr.bf16.mxu0 %v2163_v36 }
 0xa40   : > { %2007 = vmatpush3.bf16.msra.mxu0 %v2164_v37 }
 0xa41   : > { %2008 = vmatprep.subr.bf16.mxu0 %v2165_v38 }
 0xa42   : > { %1944 = vmatmul.mubr.msk.bf16.gmra.mxu1 %vm420_vm0, %v1471_v32 }
 0xa44   : > { %2009 = vmatpush3.bf16.msra.mxu0 %v2166_v40 }
 0xa45   : > { %2010 = vmatprep.subr.bf16.mxu0 %v2167_v41 }
 0xa48   : > { %2011 = vmatpush3.bf16.msra.mxu0 %v2168_v42 }
 0xa49   : > { %2012 = vmatprep.subr.bf16.mxu0 %v2169_v43 }
 0xa4c   : > { %2013 = vmatpush3.bf16.msra.mxu0 %v2170_v0 }
 0xa4d   : > { %2014 = vmatprep.subr.bf16.mxu0 %v2171_v58 }
 0xa50   : > { %2015 = vmatpush3.bf16.msra.mxu0 %v2172_v46 }
 0xa51   : > { %2016 = vmatprep.subr.bf16.mxu0 %v2173_v1 }
 0xa54   : > { %2017 = vmatpush3.bf16.msra.mxu0 %v2174_v2 }
 0xafa   : > { %v1572_v53 = vpop.f32.mrf.mxu1 }
 0xafb   : > { %v1573_v54 = vadd.f32 %v1572_v53, %v1485_v51 }
 0xafc   : > { %v1574_v55 = vpop.f32.mrf.mxu1 }
 0xafd   : > { %v1595_v56 = vmul.f32 0.044715, %v1573_v54  ;;  %v1575_v57 = vadd.f32 %v1574_v55, %v1489_v52  ;;  %v1589_v47 = vmul.f32 0.5, %v1573_v54 }
 0xafe   : > { %v1576_v59 = vpop.f32.mrf.mxu1 }
 0xaff   : > { %v1601_v60 = vmul.f32 %v1595_v56, %v1573_v54  ;;  %v1596_v61 = vmul.f32 0.044715, %v1575_v57  ;;  %v1577_v11 = vadd.f32 %v1576_v59, %v1485_v51  ;;  %v1590_v1 = vmul.f32 0.5, %v1575_v57 }
 0xb00   : > { %v1578_v63 = vpop.f32.mrf.mxu1 }
 0xb01   : > { %v1607_v3 = vmul.f32 %v1601_v60, %v1573_v54  ;;  %v1602_v4 = vmul.f32 %v1596_v61, %v1575_v57  ;;  %v1597_v5 = vmul.f32 0.044715, %v1577_v11  ;;  %v1579_v7 = vadd.f32 %v1578_v63, %v1489_v52 }
 0xb02   : > { %v1582_v8 = vpop.f32.mrf.mxu1  ;;  %v1591_v58 = vmul.f32 0.5, %v1577_v11 }
 0xb03   : > { %v1613_v10 = vadd.f32 %v1607_v3, %v1573_v54  ;;  %v1608_v13 = vmul.f32 %v1602_v4, %v1575_v57  ;;  %v1603_v12 = vmul.f32 %v1597_v5, %v1577_v11  ;;  %v1598_v14 = vmul.f32 0.044715, %v1579_v7  ;;  %v1945_v5 = vld [vmem:[%s2700_s11] ss:$0 sm:$0xff] }
 0xb04   : > { %v1583_v15 = vadd.f32 %v1582_v8, %v1485_v51  ;;  %v1584_v6 = vpop.f32.mrf.mxu1  ;;  %v1592_v2 = vmul.f32 0.5, %v1579_v7 }
 0xb05   : > { %v1619_v9 = vmul.f32 0.7978846, %v1613_v10  ;;  %v1609_v16 = vmul.f32 %v1603_v12, %v1577_v11  ;;  %v1604_v17 = vmul.f32 %v1598_v14, %v1579_v7  ;;  %v1585_v18 = vadd.f32 %v1584_v6, %v1489_v52 }
 0xb06   : > { %v1599_v19 = vmul.f32 0.044715, %v1583_v15  ;;  %v1586_v20 = vpop.f32.mrf.mxu1  ;;  %v1614_v21 = vadd.f32 %v1608_v13, %v1575_v57 }
 0xb07   : > { %v1615_v22 = vadd.f32 %v1609_v16, %v1577_v11  ;;  %v1610_v23 = vmul.f32 %v1604_v17, %v1579_v7  ;;  %v1600_v24 = vmul.f32 0.044715, %v1585_v18  ;;  %2235 = vtanh.f32 %v1619_v9 }
 0xb08   : > { %v1605_v26 = vmul.f32 %v1599_v19, %v1583_v15  ;;  %v1587_v27 = vpop.f32.mrf.mxu1  ;;  %v1620_v28 = vmul.f32 0.7978846, %v1614_v21  ;;  %v1594_v56 = vmul.f32 0.5, %v1585_v18  ;;  %v1593_v11 = vmul.f32 0.5, %v1583_v15 }
 0xb09   : > { %v1621_v29 = vmul.f32 0.7978846, %v1615_v22  ;;  %v1606_v30 = vmul.f32 %v1600_v24, %v1585_v18  ;;  %v1616_v31 = vadd.f32 %v1610_v23, %v1579_v7 }
 0xb0a   : > { %2237 = vtanh.f32 %v1620_v28  ;;  %v1611_v32 = vmul.f32 %v1605_v26, %v1583_v15 }
 0xb0b   : > { %2239 = vtanh.f32 %v1621_v29  ;;  %v1622_v33 = vmul.f32 0.7978846, %v1616_v31  ;;  %v1612_v34 = vmul.f32 %v1606_v30, %v1585_v18 }
 0xb0c   : > { %v1617_v35 = vadd.f32 %v1611_v32, %v1583_v15 }
 0xb0d   : > { %2241 = vtanh.f32 %v1622_v33  ;;  %v1618_v25 = vadd.f32 %v1612_v34, %v1585_v18 }
 0xb0e   : > { %v1623_v36 = vmul.f32 0.7978846, %v1617_v35 }
 0xb0f   : > { %v1624_v37 = vmul.f32 0.7978846, %v1618_v25 }
 0xb10   : > { %2243 = vtanh.f32 %v1623_v36 }
 0xb11   : > { %2245 = vtanh.f32 %v1624_v37 }
 0xb14   : > { %v2236_v38 = vpop.eup %2235 }
 0xb15   : > { %v1631_v46 = vadd.f32 1.0, %v2236_v38 }
 0xb17   : > { %v2238_v40 = vpop.eup %2237  ;;  %v1637_v53 = vmul.f32 %v1631_v46, %v1589_v47 }
 0xb18   : > { %v2240_v41 = vpop.eup %2239  ;;  %v1632_v42 = vadd.f32 1.0, %v2238_v40 }
 0xb19   : > { %v1633_v43 = vadd.f32 1.0, %v2240_v41 }
 0xb1a   : > { %v2242_v0 = vpop.eup %2241  ;;  %v1638_v50 = vmul.f32 %v1632_v42, %v1590_v1 }
 0xb1b   : > { %v1634_v62 = vadd.f32 1.0, %v2242_v0  ;;  %v1639_v48 = vmul.f32 %v1633_v43, %v1591_v58 }
 0xb1d   : > { %v2244_v49 = vpop.eup %2243  ;;  %v1640_v51 = vmul.f32 %v1634_v62, %v1592_v2  ;;  %v1643_v60 = vpack.c.bf16 %v1639_v48, %v1637_v53 }
 0xb1e   : > { %v2246_v52 = vpop.eup %2245  ;;  %v1635_v61 = vadd.f32 1.0, %v2244_v49 }
 0xb1f   : > { %v1644_v55 = vpack.c.bf16 %v1640_v51, %v1638_v50  ;;  %v1636_v59 = vadd.f32 1.0, %v2246_v52 }
 0xb20   : > { %v1641_v3 = vmul.f32 %v1635_v61, %v1593_v11 }
 0xb21   : > { %1814 = vmatprep.mubr.bf16.mxu0 %v1644_v55  ;;  %v1642_v63 = vmul.f32 %v1636_v59, %v1594_v56 }
 0xb22   : > { %1815 = vmatmul.mubr.bf16.vlgmr.msra.gmra.mxu0 %v1643_v60  ;;  %v1645_v54 = vpack.c.bf16 %v1641_v3, %v1641_v3 }
 0xb23   : > { %v1646_v57 = vpack.c.bf16 %v1642_v63, %v1642_v63 }
 0xb25   : > { %1822 = vmatprep.mubr.bf16.mxu0 %v1646_v57 }
 0xb2a   : > { %1823 = vmatmul.mubr.bf16.gmra.mxu0 %v1645_v54 }
 0xbe2   : > { %v2018_v4 = vpop.f32.mrf.mxu0 }
 0xbe4   : > { %v2019_v7 = vpop.f32.mrf.mxu0 }
 0xbe5   : > { %v2020_v8 = vadd.f32 %v2019_v7, %v2018_v4 }
 0xbe6   : > { %v2021_v10 = vpop.f32.mrf.mxu0 }
 0xbe7   : > { %v1817_v13 = vadd.f32 %v2020_v8, %v1945_v5 }
 0xbe8   : > { %v2022_v12 = vpop.f32.mrf.mxu0 }
 0xbe9   : > { %v1830_v14 = vadd.f32 %v1817_v13, %v2568_v39  ;;  %v2023_v15 = vadd.f32 %v2022_v12, %v2021_v10 }
 0xbea   : > { %v2024_v6 = vpop.f32.mrf.mxu0 }
 0xbeb   : > { %1833 = vst.msk [vmem:[%s413_s14] sm:$0xff] %vm420_vm0, %v1830_v14  ;;  %v1820_v9 = vadd.f32 %v2023_v15, %v1945_v5 }
 0xbec   : > { %v2025_v16 = vpop.f32.mrf.mxu0 }
 0xbed   : > { %v1831_v17 = vadd.f32 %v1820_v9, %v2574_v44  ;;  %v2026_v18 = vadd.f32 %v2025_v16, %v2024_v6 }
 0xbee   : > { %v2027_v19 = vpop.f32.mrf.mxu0 }
 0xbef   : > { %1834 = vst.msk [vmem:[%s413_s14 + $0x8] sm:$0xff] %vm420_vm0, %v1831_v17  ;;  %v1825_v20 = vadd.f32 %v2026_v18, %v1945_v5 }
 0xbf0   : > { %v2028_v21 = vpop.f32.mrf.mxu0 }
 0xbf1   : > { %v1832_v22 = vadd.f32 %v1825_v20, %v2576_v45 }
 0xbf3   : > { %1835 = vst.msk [vmem:[%s413_s14 + $0x10] sm:$0x1] %vm427_vm1, %v1832_v22 }
 0xbf4 PF: > { %s22_s21 = sadd.s32 1, %s2253_s21  }
 0xbf5   : > { %p19_p4 = scmp.ge.s32.totalorder %s22_s21, 4  }
 0xbf7   :  { %21 = sbr.rel (!%p19_p4) target bundleno = 1 (0x1), region = 98 }

</bundles_post_ra>
